<compile_context>
chip_gen: v6e
topology: v6e:2x2x1
jax: 0.10.0
libtpu: 0.0.40
codegen_flags: <defaults>
</compile_context>

<pallas_src>
import functools

import jax
import jax.numpy as jnp
from jax.experimental import pallas as pl
from jax.experimental.pallas import tpu as pltpu


# Packed "small f32 constants" layout: each segment is padded to a multiple of
# 128 lanes so every in-kernel slice starts lane-aligned.
# Order: fb1, fb2, fb3, lb1, lb2, cb1, cb2, cb3, cw4_row, cb4
_BIAS_SIZES = (1024, 512, 64, 128, 64, 256, 128, 64, 64, 1)


def _bias_layout(sizes, align=128):
    offs, o = [], 0
    for s in sizes:
        offs.append(o)
        o += -(-s // align) * align
    return tuple(offs), o


_BIAS_OFFS, _BIAS_TOTAL = _bias_layout(_BIAS_SIZES)


def _bias(bias_ref, idx):
    off, size = _BIAS_OFFS[idx], _BIAS_SIZES[idx]
    return bias_ref[:, off:off + size]          # static lane-aligned slice, (1, size)


def _attack_kernel(posterior_dim, class_dim,
                   xl_ref,
                   fw1, fw2, fw3,           # features: pd -> 1024 -> 512 -> 64  (bf16)
                   lw1, lw2,                # labels:   cd -> 128 -> 64          (bf16)
                   c1x, c1l, cw2, cw3,      # combine:  (64|64) -> 256 -> 128 -> 64
                   bias_ref,                # packed f32: 9 biases + final (1,64) row
                   out_ref,
                   *scratch):
    bf16 = jnp.bfloat16
    manual_fw2 = bool(scratch)               # static (trace-time) flag

    if manual_fw2:
        # fw2 is a raw HBM ref; stream it into VMEM while the early layers run.
        fw2_buf, fw2_sem = scratch
        fw2_cp = pltpu.make_async_copy(fw2, fw2_buf, fw2_sem)
        fw2_cp.start()

    xl = xl_ref[...]
    x = xl[:, :posterior_dim].astype(bf16)
    lab = xl[:, posterior_dim:posterior_dim + class_dim].astype(bf16)

    def dense(h_bf16, w_ref, b_idx):
        z = jnp.dot(h_bf16, w_ref[...], preferred_element_type=jnp.float32)
        z = z + _bias(bias_ref, b_idx)
        return jnp.maximum(z, 0.0).astype(bf16)     # keep activations bf16

    # Features layer 1 + the full labels branch first: this compute overlaps
    # the in-flight fw2 DMA in single-step (small-batch) mode.
    h = dense(x, fw1, 0)
    g = dense(lab, lw1, 3)
    out_l = dense(g, lw2, 4)

    if manual_fw2:
        fw2_cp.wait()
        w2 = fw2_buf[...]
    else:
        w2 = fw2[...]
    h = jnp.maximum(jnp.dot(h, w2, preferred_element_type=jnp.float32)
                    + _bias(bias_ref, 1), 0.0).astype(bf16)
    out_x = dense(h, fw3, 2)

    # combine branch: cat(out_x, out_l) @ cw1 == out_x @ cw1_x + out_l @ cw1_l
    c = jnp.dot(out_x, c1x[...], preferred_element_type=jnp.float32)
    c = c + jnp.dot(out_l, c1l[...], preferred_element_type=jnp.float32)
    c = jnp.maximum(c + _bias(bias_ref, 5), 0.0).astype(bf16)
    c = dense(c, cw2, 6)
    c = dense(c, cw3, 7)

    # final (64 -> 1) layer on VPU (multiply) + XLU (lane reduce), f32 weights
    w4 = _bias(bias_ref, 8)                       # (1, 64)
    b4 = _bias(bias_ref, 9)                       # (1, 1)
    z = jnp.sum(c.astype(jnp.float32) * w4, axis=-1, keepdims=True) + b4

    # numerically-stable sigmoid; divide done on the EUP via approx reciprocal
    e = jnp.exp(-jnp.abs(z))
    r = pl.reciprocal(1.0 + e, approx=True)
    out_ref[...] = jnp.where(z >= 0.0, r, e * r).astype(out_ref.dtype)


def attack_adv_reg_forward(x, l, weights, bias_pack, *, tb=None):
    """weights: 9 bf16 (in, out) matrices; bias_pack: (1, _BIAS_TOTAL) f32."""
    B, pd = x.shape
    cd = l.shape[1]
    xl = jnp.concatenate([x, l], axis=1)          # single batched input DMA

    if tb is None:
        if B <= 256:
            tb = B                                # single step; fw2 DMA overlapped
        else:
            # >=2 grid blocks so v7x's two TensorCores both get work; cap 512 rows.
            half = -(-B // 2)
            half = -(-half // 8) * 8
            tb = min(512, half)
    num_blocks = -(-B // tb)
    manual_fw2 = (num_blocks == 1)

    def batch_spec(feat):
        return pl.BlockSpec((tb, feat), lambda i: (i, 0))

    def resident_spec(a):                 # constant block index -> loaded once
        return pl.BlockSpec(a.shape, lambda i: (0, 0))

    fw1, fw2, fw3, lw1, lw2, c1x, c1l, cw2, cw3 = weights

    w_specs = [resident_spec(fw1)]
    if manual_fw2:
        w_specs.append(pl.BlockSpec(memory_space=pl.ANY))   # raw HBM; DMA'd in-kernel
        scratch_shapes = [pltpu.VMEM(fw2.shape, fw2.dtype),
                          pltpu.SemaphoreType.DMA]
    else:
        w_specs.append(resident_spec(fw2))
        scratch_shapes = []
    w_specs += [resident_spec(w) for w in (fw3, lw1, lw2, c1x, c1l, cw2, cw3)]

    in_specs = [batch_spec(pd + cd)] + w_specs + [resident_spec(bias_pack)]

    compiler_kwargs = dict(dimension_semantics=("parallel",))
    if tb >= 512:
        compiler_kwargs["vmem_limit_bytes"] = 32 * 1024 * 1024

    kernel = functools.partial(_attack_kernel, pd, cd)

    return pl.pallas_call(
        kernel,
        out_shape=jax.ShapeDtypeStruct((B, 1), jnp.float32),
        grid_spec=pltpu.PrefetchScalarGridSpec(
            num_scalar_prefetch=0,
            grid=(num_blocks,),
            in_specs=in_specs,
            out_specs=pl.BlockSpec((tb, 1), lambda i: (i, 0)),
            scratch_shapes=scratch_shapes,
        ),
        compiler_params=pltpu.CompilerParams(**compiler_kwargs),
    )(xl, *weights, bias_pack)


def init_params(posterior_dim, key):
    """f32 params mimicking PyTorch nn.Linear default init.
    Weights stored (in, out); biases (1, out).
    NB: the original module forces class_dim = posterior_dim."""
    class_dim = posterior_dim
    layer_dims = [
        (posterior_dim, 1024), (1024, 512), (512, 64),    # features
        (class_dim, 128), (128, 64),                      # labels
        (128, 256), (256, 128), (128, 64), (64, 1),       # combine
    ]
    params = []
    for (fan_in, fan_out) in layer_dims:
        key, kw, kb = jax.random.split(key, 3)
        bound = 1.0 / jnp.sqrt(fan_in)
        params.append(jax.random.uniform(kw, (fan_in, fan_out), jnp.float32, -bound, bound))
        params.append(jax.random.uniform(kb, (1, fan_out), jnp.float32, -bound, bound))
    return tuple(params)


def pack_params(params):
    """f32 (W, b) tuple -> (9 bf16 weights, packed f32 bias/last-row array)."""
    (fw1, fb1, fw2, fb2, fw3, fb3,
     lw1, lb1, lw2, lb2,
     cw1, cb1, cw2, cb2, cw3, cb3, cw4, cb4) = params
    cw1_x, cw1_l = cw1[:64, :], cw1[64:, :]
    weights = tuple(w.astype(jnp.bfloat16)
                    for w in (fw1, fw2, fw3, lw1, lw2, cw1_x, cw1_l, cw2, cw3))
    smalls = (fb1, fb2, fb3, lb1, lb2, cb1, cb2, cb3, cw4.reshape(1, 64), cb4)
    chunks = []
    for size, v in zip(_BIAS_SIZES, smalls):
        v = v.reshape(1, -1).astype(jnp.float32)
        pad = -(-size // 128) * 128 - size
        if pad:
            v = jnp.pad(v, ((0, 0), (0, pad)))
        chunks.append(v)
    bias_pack = jnp.concatenate(chunks, axis=1)
    assert bias_pack.shape == (1, _BIAS_TOTAL)
    return weights, bias_pack


def reference_forward_f32(x, l, params):
    """Original module semantics, pure f32."""
    (fw1, fb1, fw2, fb2, fw3, fb3,
     lw1, lb1, lw2, lb2,
     cw1, cb1, cw2, cb2, cw3, cb3, cw4, cb4) = params
    r = lambda v: jnp.maximum(v, 0.0)
    h = r(x @ fw1 + fb1)
    h = r(h @ fw2 + fb2)
    ox = r(h @ fw3 + fb3)
    g = r(l @ lw1 + lb1)
    ol = r(g @ lw2 + lb2)
    c = jnp.concatenate([ox, ol], axis=1)
    c = r(c @ cw1 + cb1)
    c = r(c @ cw2 + cb2)
    c = r(c @ cw3 + cb3)
    z = c @ cw4 + cb4
    return 1.0 / (1.0 + jnp.exp(-z))


def reference_forward_bf16(x, l, params):
    """Mirrors the kernel's numerics: bf16 matmul inputs, f32 accumulation,
    bf16 inter-layer activations, final layer on the f32 vector path."""
    (fw1, fb1, fw2, fb2, fw3, fb3,
     lw1, lb1, lw2, lb2,
     cw1, cb1, cw2, cb2, cw3, cb3, cw4, cb4) = params
    bf16 = jnp.bfloat16

    def dense(a, w, b):
        z = jnp.dot(a.astype(bf16), w.astype(bf16), preferred_element_type=jnp.float32)
        return jnp.maximum(z + b, 0.0).astype(bf16)

    h = dense(x, fw1, fb1)
    g = dense(l, lw1, lb1)
    ol = dense(g, lw2, lb2)
    h = dense(h, fw2, fb2)
    ox = dense(h, fw3, fb3)
    c = (jnp.dot(ox, cw1[:64, :].astype(bf16), preferred_element_type=jnp.float32)
         + jnp.dot(ol, cw1[64:, :].astype(bf16), preferred_element_type=jnp.float32))
    c = jnp.maximum(c + cb1, 0.0).astype(bf16)
    c = dense(c, cw2, cb2)
    c = dense(c, cw3, cb3)
    z = jnp.sum(c.astype(jnp.float32) * cw4.reshape(1, 64), axis=-1, keepdims=True) + cb4
    return 1.0 / (1.0 + jnp.exp(-z))


if __name__ == "__main__":
    posterior_dim = 16   # class_dim is forced equal to posterior_dim by the module
    batch = 8

    key = jax.random.PRNGKey(0)
    kx, kl, kp = jax.random.split(key, 3)
    x = jax.random.normal(kx, (batch, posterior_dim), jnp.float32)
    l = jax.random.normal(kl, (batch, posterior_dim), jnp.float32)
    params = init_params(posterior_dim, kp)
    weights, bias_pack = pack_params(params)

    out = attack_adv_reg_forward(x, l, weights, bias_pack)
    out = jax.block_until_ready(out)
    assert out.shape == (batch, 1)

    ref_bf16 = reference_forward_bf16(x, l, params)   # same numerics as kernel
    ref_f32 = reference_forward_f32(x, l, params)     # original f32 semantics
    assert jnp.allclose(out, ref_bf16, atol=2e-3, rtol=2e-3), (out, ref_bf16)
    assert jnp.allclose(out, ref_f32, atol=5e-2, rtol=5e-2), (out, ref_f32)

    print("KERNEL_OK")
</pallas_src>

<mosaic_0001>
module attributes {stable_mosaic.version = 11 : i64} {
  func.func @_attack_kernel(%arg0: i32, %arg1: memref<8x32xf32, #tpu.memory_space<vmem>>, %arg2: memref<16x1024xbf16, #tpu.memory_space<vmem>>, %arg3: memref<1024x512xbf16, #tpu.memory_space<any>>, %arg4: memref<512x64xbf16, #tpu.memory_space<vmem>>, %arg5: memref<16x128xbf16, #tpu.memory_space<vmem>>, %arg6: memref<128x64xbf16, #tpu.memory_space<vmem>>, %arg7: memref<64x256xbf16, #tpu.memory_space<vmem>>, %arg8: memref<64x256xbf16, #tpu.memory_space<vmem>>, %arg9: memref<256x128xbf16, #tpu.memory_space<vmem>>, %arg10: memref<128x64xbf16, #tpu.memory_space<vmem>>, %arg11: memref<1x2688xf32, #tpu.memory_space<vmem>>, %arg12: memref<8x1xf32, #tpu.memory_space<vmem>>, %arg13: memref<1024x512xbf16, #tpu.memory_space<vmem>>, %arg14: memref<!tpu.dma_semaphore, #tpu.memory_space<semaphore_mem>>) attributes {dimension_semantics = [#tpu.dimension_semantics<parallel>], iteration_bounds = array<i64: 1>, scalar_prefetch = 0 : i64, scratch_operands = 2 : i64, tpu.core_type = #tpu.core_type<tc>, window_params = [{transform_indices = @transform_0, window_bounds = array<i64: 8, 32>}, {pipeline_mode = #tpu.pipeline_mode<synchronous>, transform_indices = @transform_1, window_bounds = array<i64: 16, 1024>}, {}, {pipeline_mode = #tpu.pipeline_mode<synchronous>, transform_indices = @transform_3, window_bounds = array<i64: 512, 64>}, {pipeline_mode = #tpu.pipeline_mode<synchronous>, transform_indices = @transform_4, window_bounds = array<i64: 16, 128>}, {pipeline_mode = #tpu.pipeline_mode<synchronous>, transform_indices = @transform_5, window_bounds = array<i64: 128, 64>}, {pipeline_mode = #tpu.pipeline_mode<synchronous>, transform_indices = @transform_6, window_bounds = array<i64: 64, 256>}, {pipeline_mode = #tpu.pipeline_mode<synchronous>, transform_indices = @transform_7, window_bounds = array<i64: 64, 256>}, {pipeline_mode = #tpu.pipeline_mode<synchronous>, transform_indices = @transform_8, window_bounds = array<i64: 256, 128>}, {pipeline_mode = #tpu.pipeline_mode<synchronous>, transform_indices = @transform_9, window_bounds = array<i64: 128, 64>}, {pipeline_mode = #tpu.pipeline_mode<synchronous>, transform_indices = @transform_10, window_bounds = array<i64: 1, 2688>}, {transform_indices = @transform_11, window_bounds = array<i64: 8, 1>}]} {
    tpu.enqueue_dma source(%arg3 : memref<1024x512xbf16, #tpu.memory_space<any>>) target(%arg13 : memref<1024x512xbf16, #tpu.memory_space<vmem>>) target_semaphore(%arg14 : memref<!tpu.dma_semaphore, #tpu.memory_space<semaphore_mem>>)
    %c0 = arith.constant 0 : index
    %c0_0 = arith.constant 0 : index
    %0 = vector.load %arg1[%c0, %c0_0] : memref<8x32xf32, #tpu.memory_space<vmem>>, vector<8x32xf32>
    %1 = vector.extract_strided_slice %0 {offsets = [0, 0], sizes = [8, 16], strides = [1, 1]} : vector<8x32xf32> to vector<8x16xf32>
    %2 = arith.truncf %1 : vector<8x16xf32> to vector<8x16xbf16>
    %3 = vector.extract_strided_slice %0 {offsets = [0, 16], sizes = [8, 16], strides = [1, 1]} : vector<8x32xf32> to vector<8x16xf32>
    %4 = arith.truncf %3 : vector<8x16xf32> to vector<8x16xbf16>
    %c0_1 = arith.constant 0 : index
    %c0_2 = arith.constant 0 : index
    %5 = vector.load %arg2[%c0_1, %c0_2] : memref<16x1024xbf16, #tpu.memory_space<vmem>>, vector<16x1024xbf16>
    %cst = arith.constant dense<0.000000e+00> : vector<8x1024xf32>
    %6 = tpu.matmul %2, %5, %cst {dimension_numbers = #tpu.dot_dimension_numbers<[1], [0], [0], [1], [0, 0, 1, 1], [], []>} : vector<8x16xbf16>, vector<16x1024xbf16>, vector<8x1024xf32> -> vector<8x1024xf32>
    %c0_3 = arith.constant 0 : index
    %c0_4 = arith.constant 0 : index
    %7 = vector.load %arg11[%c0_3, %c0_4] : memref<1x2688xf32, #tpu.memory_space<vmem>>, vector<1x1024xf32>
    %8 = vector.broadcast %7 : vector<1x1024xf32> to vector<8x1024xf32>
    %9 = arith.addf %6, %8 : vector<8x1024xf32>
    %cst_5 = arith.constant 0.000000e+00 : f32
    %10 = vector.broadcast %cst_5 : f32 to vector<8x1024xf32>
    %11 = arith.maximumf %9, %10 : vector<8x1024xf32>
    %12 = arith.truncf %11 : vector<8x1024xf32> to vector<8x1024xbf16>
    %c0_6 = arith.constant 0 : index
    %c0_7 = arith.constant 0 : index
    %13 = vector.load %arg5[%c0_6, %c0_7] : memref<16x128xbf16, #tpu.memory_space<vmem>>, vector<16x128xbf16>
    %cst_8 = arith.constant dense<0.000000e+00> : vector<8x128xf32>
    %14 = tpu.matmul %4, %13, %cst_8 {dimension_numbers = #tpu.dot_dimension_numbers<[1], [0], [0], [1], [0, 0, 1, 1], [], []>} : vector<8x16xbf16>, vector<16x128xbf16>, vector<8x128xf32> -> vector<8x128xf32>
    %c0_9 = arith.constant 0 : index
    %c1664 = arith.constant 1664 : index
    %15 = vector.load %arg11[%c0_9, %c1664] : memref<1x2688xf32, #tpu.memory_space<vmem>>, vector<1x128xf32>
    %16 = vector.broadcast %15 : vector<1x128xf32> to vector<8x128xf32>
    %17 = arith.addf %14, %16 : vector<8x128xf32>
    %cst_10 = arith.constant 0.000000e+00 : f32
    %18 = vector.broadcast %cst_10 : f32 to vector<8x128xf32>
    %19 = arith.maximumf %17, %18 : vector<8x128xf32>
    %20 = arith.truncf %19 : vector<8x128xf32> to vector<8x128xbf16>
    %c0_11 = arith.constant 0 : index
    %c0_12 = arith.constant 0 : index
    %21 = vector.load %arg6[%c0_11, %c0_12] : memref<128x64xbf16, #tpu.memory_space<vmem>>, vector<128x64xbf16>
    %cst_13 = arith.constant dense<0.000000e+00> : vector<8x64xf32>
    %22 = tpu.matmul %20, %21, %cst_13 {dimension_numbers = #tpu.dot_dimension_numbers<[1], [0], [0], [1], [0, 0, 1, 1], [], []>} : vector<8x128xbf16>, vector<128x64xbf16>, vector<8x64xf32> -> vector<8x64xf32>
    %c0_14 = arith.constant 0 : index
    %c1792 = arith.constant 1792 : index
    %23 = vector.load %arg11[%c0_14, %c1792] : memref<1x2688xf32, #tpu.memory_space<vmem>>, vector<1x64xf32>
    %24 = vector.broadcast %23 : vector<1x64xf32> to vector<8x64xf32>
    %25 = arith.addf %22, %24 : vector<8x64xf32>
    %cst_15 = arith.constant 0.000000e+00 : f32
    %26 = vector.broadcast %cst_15 : f32 to vector<8x64xf32>
    %27 = arith.maximumf %25, %26 : vector<8x64xf32>
    %28 = arith.truncf %27 : vector<8x64xf32> to vector<8x64xbf16>
    tpu.wait_dma2 semaphore(%arg14 : memref<!tpu.dma_semaphore, #tpu.memory_space<semaphore_mem>>) src(%arg3 : memref<1024x512xbf16, #tpu.memory_space<any>>) dst(%arg13 : memref<1024x512xbf16, #tpu.memory_space<vmem>>)
    %c0_16 = arith.constant 0 : index
    %c0_17 = arith.constant 0 : index
    %29 = vector.load %arg13[%c0_16, %c0_17] : memref<1024x512xbf16, #tpu.memory_space<vmem>>, vector<1024x512xbf16>
    %cst_18 = arith.constant dense<0.000000e+00> : vector<8x512xf32>
    %30 = tpu.matmul %12, %29, %cst_18 {dimension_numbers = #tpu.dot_dimension_numbers<[1], [0], [0], [1], [0, 0, 1, 1], [], []>} : vector<8x1024xbf16>, vector<1024x512xbf16>, vector<8x512xf32> -> vector<8x512xf32>
    %c0_19 = arith.constant 0 : index
    %c1024 = arith.constant 1024 : index
    %31 = vector.load %arg11[%c0_19, %c1024] : memref<1x2688xf32, #tpu.memory_space<vmem>>, vector<1x512xf32>
    %32 = vector.broadcast %31 : vector<1x512xf32> to vector<8x512xf32>
    %33 = arith.addf %30, %32 : vector<8x512xf32>
    %cst_20 = arith.constant 0.000000e+00 : f32
    %34 = vector.broadcast %cst_20 : f32 to vector<8x512xf32>
    %35 = arith.maximumf %33, %34 : vector<8x512xf32>
    %36 = arith.truncf %35 : vector<8x512xf32> to vector<8x512xbf16>
    %c0_21 = arith.constant 0 : index
    %c0_22 = arith.constant 0 : index
    %37 = vector.load %arg4[%c0_21, %c0_22] : memref<512x64xbf16, #tpu.memory_space<vmem>>, vector<512x64xbf16>
    %cst_23 = arith.constant dense<0.000000e+00> : vector<8x64xf32>
    %38 = tpu.matmul %36, %37, %cst_23 {dimension_numbers = #tpu.dot_dimension_numbers<[1], [0], [0], [1], [0, 0, 1, 1], [], []>} : vector<8x512xbf16>, vector<512x64xbf16>, vector<8x64xf32> -> vector<8x64xf32>
    %c0_24 = arith.constant 0 : index
    %c1536 = arith.constant 1536 : index
    %39 = vector.load %arg11[%c0_24, %c1536] : memref<1x2688xf32, #tpu.memory_space<vmem>>, vector<1x64xf32>
    %40 = vector.broadcast %39 : vector<1x64xf32> to vector<8x64xf32>
    %41 = arith.addf %38, %40 : vector<8x64xf32>
    %cst_25 = arith.constant 0.000000e+00 : f32
    %42 = vector.broadcast %cst_25 : f32 to vector<8x64xf32>
    %43 = arith.maximumf %41, %42 : vector<8x64xf32>
    %44 = arith.truncf %43 : vector<8x64xf32> to vector<8x64xbf16>
    %c0_26 = arith.constant 0 : index
    %c0_27 = arith.constant 0 : index
    %45 = vector.load %arg7[%c0_26, %c0_27] : memref<64x256xbf16, #tpu.memory_space<vmem>>, vector<64x256xbf16>
    %cst_28 = arith.constant dense<0.000000e+00> : vector<8x256xf32>
    %46 = tpu.matmul %44, %45, %cst_28 {dimension_numbers = #tpu.dot_dimension_numbers<[1], [0], [0], [1], [0, 0, 1, 1], [], []>} : vector<8x64xbf16>, vector<64x256xbf16>, vector<8x256xf32> -> vector<8x256xf32>
    %c0_29 = arith.constant 0 : index
    %c0_30 = arith.constant 0 : index
    %47 = vector.load %arg8[%c0_29, %c0_30] : memref<64x256xbf16, #tpu.memory_space<vmem>>, vector<64x256xbf16>
    %cst_31 = arith.constant dense<0.000000e+00> : vector<8x256xf32>
    %48 = tpu.matmul %28, %47, %cst_31 {dimension_numbers = #tpu.dot_dimension_numbers<[1], [0], [0], [1], [0, 0, 1, 1], [], []>} : vector<8x64xbf16>, vector<64x256xbf16>, vector<8x256xf32> -> vector<8x256xf32>
    %49 = arith.addf %46, %48 : vector<8x256xf32>
    %c0_32 = arith.constant 0 : index
    %c1920 = arith.constant 1920 : index
    %50 = vector.load %arg11[%c0_32, %c1920] : memref<1x2688xf32, #tpu.memory_space<vmem>>, vector<1x256xf32>
    %51 = vector.broadcast %50 : vector<1x256xf32> to vector<8x256xf32>
    %52 = arith.addf %49, %51 : vector<8x256xf32>
    %cst_33 = arith.constant 0.000000e+00 : f32
    %53 = vector.broadcast %cst_33 : f32 to vector<8x256xf32>
    %54 = arith.maximumf %52, %53 : vector<8x256xf32>
    %55 = arith.truncf %54 : vector<8x256xf32> to vector<8x256xbf16>
    %c0_34 = arith.constant 0 : index
    %c0_35 = arith.constant 0 : index
    %56 = vector.load %arg9[%c0_34, %c0_35] : memref<256x128xbf16, #tpu.memory_space<vmem>>, vector<256x128xbf16>
    %cst_36 = arith.constant dense<0.000000e+00> : vector<8x128xf32>
    %57 = tpu.matmul %55, %56, %cst_36 {dimension_numbers = #tpu.dot_dimension_numbers<[1], [0], [0], [1], [0, 0, 1, 1], [], []>} : vector<8x256xbf16>, vector<256x128xbf16>, vector<8x128xf32> -> vector<8x128xf32>
    %c0_37 = arith.constant 0 : index
    %c2176 = arith.constant 2176 : index
    %58 = vector.load %arg11[%c0_37, %c2176] : memref<1x2688xf32, #tpu.memory_space<vmem>>, vector<1x128xf32>
    %59 = vector.broadcast %58 : vector<1x128xf32> to vector<8x128xf32>
    %60 = arith.addf %57, %59 : vector<8x128xf32>
    %cst_38 = arith.constant 0.000000e+00 : f32
    %61 = vector.broadcast %cst_38 : f32 to vector<8x128xf32>
    %62 = arith.maximumf %60, %61 : vector<8x128xf32>
    %63 = arith.truncf %62 : vector<8x128xf32> to vector<8x128xbf16>
    %c0_39 = arith.constant 0 : index
    %c0_40 = arith.constant 0 : index
    %64 = vector.load %arg10[%c0_39, %c0_40] : memref<128x64xbf16, #tpu.memory_space<vmem>>, vector<128x64xbf16>
    %cst_41 = arith.constant dense<0.000000e+00> : vector<8x64xf32>
    %65 = tpu.matmul %63, %64, %cst_41 {dimension_numbers = #tpu.dot_dimension_numbers<[1], [0], [0], [1], [0, 0, 1, 1], [], []>} : vector<8x128xbf16>, vector<128x64xbf16>, vector<8x64xf32> -> vector<8x64xf32>
    %c0_42 = arith.constant 0 : index
    %c2304 = arith.constant 2304 : index
    %66 = vector.load %arg11[%c0_42, %c2304] : memref<1x2688xf32, #tpu.memory_space<vmem>>, vector<1x64xf32>
    %67 = vector.broadcast %66 : vector<1x64xf32> to vector<8x64xf32>
    %68 = arith.addf %65, %67 : vector<8x64xf32>
    %cst_43 = arith.constant 0.000000e+00 : f32
    %69 = vector.broadcast %cst_43 : f32 to vector<8x64xf32>
    %70 = arith.maximumf %68, %69 : vector<8x64xf32>
    %71 = arith.truncf %70 : vector<8x64xf32> to vector<8x64xbf16>
    %c0_44 = arith.constant 0 : index
    %c2432 = arith.constant 2432 : index
    %72 = vector.load %arg11[%c0_44, %c2432] : memref<1x2688xf32, #tpu.memory_space<vmem>>, vector<1x64xf32>
    %c0_45 = arith.constant 0 : index
    %c2560 = arith.constant 2560 : index
    %73 = vector.load %arg11[%c0_45, %c2560] : memref<1x2688xf32, #tpu.memory_space<vmem>>, vector<1x1xf32>
    %74 = arith.extf %71 : vector<8x64xbf16> to vector<8x64xf32>
    %75 = vector.broadcast %72 : vector<1x64xf32> to vector<8x64xf32>
    %76 = arith.mulf %74, %75 : vector<8x64xf32>
    %cst_46 = arith.constant dense<0.000000e+00> : vector<8xf32>
    %77 = vector.multi_reduction <add>, %76, %cst_46 [1] : vector<8x64xf32> to vector<8xf32>
    %78 = vector.shape_cast %77 : vector<8xf32> to vector<8x1xf32>
    %79 = vector.broadcast %73 : vector<1x1xf32> to vector<8x1xf32>
    %80 = arith.addf %78, %79 : vector<8x1xf32>
    %81 = math.absf %80 : vector<8x1xf32>
    %cst_47 = arith.constant 0.000000e+00 : f32
    %82 = vector.broadcast %cst_47 : f32 to vector<8x1xf32>
    %83 = arith.subf %82, %81 : vector<8x1xf32>
    %84 = math.exp %83 : vector<8x1xf32>
    %cst_48 = arith.constant 1.000000e+00 : f32
    %85 = vector.broadcast %cst_48 : f32 to vector<8x1xf32>
    %86 = arith.addf %85, %84 : vector<8x1xf32>
    %87 = tpu.reciprocal %86 {approx = true} : vector<8x1xf32> -> vector<8x1xf32>
    %cst_49 = arith.constant 0.000000e+00 : f32
    %88 = vector.broadcast %cst_49 : f32 to vector<8x1xf32>
    %89 = arith.cmpf oge, %80, %88 : vector<8x1xf32>
    %90 = arith.mulf %84, %87 : vector<8x1xf32>
    %91 = arith.select %89, %87, %90 : vector<8x1xi1>, vector<8x1xf32>
    %c0_50 = arith.constant 0 : index
    %c0_51 = arith.constant 0 : index
    %92 = vector.load %arg12[%c0_50, %c0_51] : memref<8x1xf32, #tpu.memory_space<vmem>>, vector<8x1xf32>
    tpu.vector_store %arg12[%c0_50, %c0_51], %91 {strides = array<i32>} : memref<8x1xf32, #tpu.memory_space<vmem>>, vector<8x1xf32>,
    return
  }
  func.func @transform_0(%arg0: i32) -> (i32, i32) {
    %c0_i32 = arith.constant 0 : i32
    %c0_i32_0 = arith.constant 0 : i32
    return %arg0, %c0_i32 : i32, i32
  }
  func.func @transform_1(%arg0: i32) -> (i32, i32) {
    %c0_i32 = arith.constant 0 : i32
    %c0_i32_0 = arith.constant 0 : i32
    %c0_i32_1 = arith.constant 0 : i32
    return %c0_i32, %c0_i32_0 : i32, i32
  }
  func.func @transform_3(%arg0: i32) -> (i32, i32) {
    %c0_i32 = arith.constant 0 : i32
    %c0_i32_0 = arith.constant 0 : i32
    %c0_i32_1 = arith.constant 0 : i32
    return %c0_i32, %c0_i32_0 : i32, i32
  }
  func.func @transform_4(%arg0: i32) -> (i32, i32) {
    %c0_i32 = arith.constant 0 : i32
    %c0_i32_0 = arith.constant 0 : i32
    %c0_i32_1 = arith.constant 0 : i32
    return %c0_i32, %c0_i32_0 : i32, i32
  }
  func.func @transform_5(%arg0: i32) -> (i32, i32) {
    %c0_i32 = arith.constant 0 : i32
    %c0_i32_0 = arith.constant 0 : i32
    %c0_i32_1 = arith.constant 0 : i32
    return %c0_i32, %c0_i32_0 : i32, i32
  }
  func.func @transform_6(%arg0: i32) -> (i32, i32) {
    %c0_i32 = arith.constant 0 : i32
    %c0_i32_0 = arith.constant 0 : i32
    %c0_i32_1 = arith.constant 0 : i32
    return %c0_i32, %c0_i32_0 : i32, i32
  }
  func.func @transform_7(%arg0: i32) -> (i32, i32) {
    %c0_i32 = arith.constant 0 : i32
    %c0_i32_0 = arith.constant 0 : i32
    %c0_i32_1 = arith.constant 0 : i32
    return %c0_i32, %c0_i32_0 : i32, i32
  }
  func.func @transform_8(%arg0: i32) -> (i32, i32) {
    %c0_i32 = arith.constant 0 : i32
    %c0_i32_0 = arith.constant 0 : i32
    %c0_i32_1 = arith.constant 0 : i32
    return %c0_i32, %c0_i32_0 : i32, i32
  }
  func.func @transform_9(%arg0: i32) -> (i32, i32) {
    %c0_i32 = arith.constant 0 : i32
    %c0_i32_0 = arith.constant 0 : i32
    %c0_i32_1 = arith.constant 0 : i32
    return %c0_i32, %c0_i32_0 : i32, i32
  }
  func.func @transform_10(%arg0: i32) -> (i32, i32) {
    %c0_i32 = arith.constant 0 : i32
    %c0_i32_0 = arith.constant 0 : i32
    %c0_i32_1 = arith.constant 0 : i32
    return %c0_i32, %c0_i32_0 : i32, i32
  }
  func.func @transform_11(%arg0: i32) -> (i32, i32) {
    %c0_i32 = arith.constant 0 : i32
    %c0_i32_0 = arith.constant 0 : i32
    return %arg0, %c0_i32 : i32, i32
  }
}

</mosaic_0001>

<bundles_post_ra>
// kernel: tpu_custom_call.1
= control target key start
LH: loop header
LB: loop body
LE: loop exit
PB: predicated region body
PF: predicated region fallthrough
CT: control target
= control target key end

     0   :  { %v4273_v3 = vmov 0   ;;  %s4274_s28 = smov 112   ;;  %vm140_vm0 = vcmask 130048   ;;  %v4275_v19 = vmov 0.0   ;;  %vm4276_vm1 = vmmov 0   ;;  %s4277_s15 = smov [#allocation2]   ;;  %s4753_s0 = inlined_call_operand.vmem [shape: f32[8,32], index: 0, kind: input, shape index: {}]   ;;  %s4754_s1 = inlined_call_operand.vmem [shape: bf16[16,1024], index: 1, kind: input, shape index: {}]   ;;  %s4755_s4 = inlined_call_operand.vmem [shape: bf16[16,128], index: 4, kind: input, shape index: {}]   ;;  %s4756_s5 = inlined_call_operand.vmem [shape: bf16[128,64], index: 5, kind: input, shape index: {}]   ;;  %s4757_s10 = inlined_call_operand.vmem [shape: f32[1,2688], index: 10, kind: input, shape index: {}]   ;;  %s4758_s2 = inlined_call_operand.hbm [shape: bf16[1024,512], index: 2, kind: input, shape index: {}]   ;;  %s4759_s3 = inlined_call_operand.vmem [shape: bf16[512,64], index: 3, kind: input, shape index: {}]   ;;  %s4760_s6 = inlined_call_operand.vmem [shape: bf16[64,256], index: 6, kind: input, shape index: {}]   ;;  %s4761_s7 = inlined_call_operand.vmem [shape: bf16[64,256], index: 7, kind: input, shape index: {}]   ;;  %s4762_s8 = inlined_call_operand.vmem [shape: bf16[256,128], index: 8, kind: input, shape index: {}]   ;;  %s4763_s9 = inlined_call_operand.vmem [shape: bf16[128,64], index: 9, kind: input, shape index: {}]   ;;  %s4764_s11 = inlined_call_operand.vmem [shape: f32[8,1], index: 11, kind: output, shape index: {}]  }
   0x1   :  { %v48_v0 = vld [vmem:[%s4753_s0] sm:$0xff]  ;;  %176 = vmatprep.mubr.bf16.mxu0 %v4273_v3  ;;  %217 = vmatprep.mubr.bf16.mxu1 %v4273_v3  ;;  %v52_v7 = vld [vmem:[%s4754_s1 + $0x10] sm:$0xff]  ;;  %v51_v10 = vld [vmem:[%s4754_s1 + $0x8] sm:$0xff]  ;;  %v60_v29 = vlaneseq }
   0x2   :  { %v50_v1 = vld [vmem:[%s4754_s1] sm:$0xff]  ;;  %v49_v4 = vpack.c.bf16 %v48_v0, %v48_v0  ;;  %v56_v8 = vld [vmem:[%s4754_s1 + $0x30] sm:$0xff]  ;;  %v55_v11 = vld [vmem:[%s4754_s1 + $0x28] sm:$0xff] }
   0x3   :  { %v54_v2 = vld [vmem:[%s4754_s1 + $0x20] sm:$0xff]  ;;  %v3282_v9 = vcombine.high %v52_v7, %v56_v8  ;;  %v53_v12 = vld [vmem:[%s4754_s1 + $0x18] sm:$0xff]  ;;  %v3281_v14 = vcombine.low %v52_v7, %v56_v8  ;;  %v3280_v15 = vcombine.high %v51_v10, %v55_v11  ;;  %v3279_v16 = vcombine.low %v51_v10, %v55_v11  ;;  %v3776_v22 = vld [vmem:[%s4756_s5 + $0x30] sm:$0xff]  }
   0x4   :  { %v3278_v5 = vcombine.high %v50_v1, %v54_v2  ;;  %v3277_v6 = vcombine.low %v50_v1, %v54_v2  ;;  %334 = vrot.lane.b32.xlu0 %v49_v4, %s4274_s28  ;;  %v57_v13 = vld [vmem:[%s4754_s1 + $0x38] sm:$0xff]  ;;  %v3774_v20 = vld [vmem:[%s4755_s4] sm:$0xff]   ;;  %v3777_v23 = vld [vmem:[%s4756_s5 + $0x28] sm:$0xff]   ;;  %v4414_v31 = vshrl.u32 %v60_v29, 7  ;;  %s44_s1 = sshll.u32 %s4277_s15, 4  ;;  %s45_s1 = int_to_ptr.vmem [resolvable:$true] %s44_s1 }
   0x5   :  { %v3284_v17 = vcombine.high %v53_v12, %v57_v13  ;;  %199 = vmatprep.subr.bf16.mxu1 %v3280_v15  ;;  %v3283_v18 = vcombine.low %v53_v12, %v57_v13  ;;  %v3775_v21 = vld [vmem:[%s4756_s5 + $0x38] sm:$0xff]   ;;  %v3778_v24 = vld [vmem:[%s4756_s5 + $0x20] sm:$0xff]   ;;  %v3780_v26 = vld [vmem:[%s4756_s5 + $0x10] sm:$0xff]   ;;  %s4259_s16 = scalar_lea.vmem %s45_s1, 32768  ;;  %p4264_p1 = scmp.lt.s32.totalorder %s45_s1, %s45_s1 }
   0x6   :  { %158 = vmatprep.subr.bf16.mxu0 %v3278_v5  ;;  %200 = vmatpush1.bf16.msra.mxu1 %v3279_v16  ;;  %v3779_v25 = vld [vmem:[%s4756_s5 + $0x18] sm:$0xff]   ;;  %v3781_v28 = vld [vmem:[%s4756_s5 + $0x8] sm:$0xff]   ;;  %v3782_v30 = vld [vmem:[%s4756_s5] sm:$0xff]   ;;  %v4417_v32 = vsub.s32 0, %v4414_v31  ;;  %v4423_v34 = vsub.s32 1, %v4414_v31  ;;  %v70_v35 = vsub.s32 2, %v4414_v31  ;;  %p4260_p0 = scmp.ne.s32.totalorder %s45_s1, %s4259_s16  ;;  %p4265_p2 = scmp.lt.s32.totalorder %s4259_s16, %s4259_s16 }
   0x7   :  { %159 = vmatpush1.bf16.msra.mxu0 %v3277_v6  ;;  %281 = vmatprep.subr.bf16.mxu1 %v3284_v17  ;;  %v58_v33 = vld [vmem:[%s4757_s10] sm:$0xff]  ;;  %v74_v37 = vsub.s32 3, %v4414_v31  ;;  %v78_v42 = vsub.s32 4, %v4414_v31  ;;  %v82_v47 = vsub.s32 5, %v4414_v31  ;;  %v86_v51 = vsub.s32 6, %v4414_v31 }
   0x8   :  { %240 = vmatprep.subr.bf16.mxu0 %v3282_v9  ;;  %v63_v36 = vrot.slane %v58_v33, %v4417_v32  ;;  %v67_v38 = vrot.slane %v58_v33, %v4423_v34  ;;  %v71_v40 = vrot.slane %v58_v33, %v70_v35  ;;  %v90_v59 = vsub.s32 7, %v4414_v31  ;;  %p4266_p3 = por %p4265_p2, %p4264_p1 }
   0x9   :  { %3286 = vmatmul.mubr.msk.bf16.vlgmr.msra.gmra.mxu1 %vm140_vm0, %v49_v4  ;;  %v75_v44 = vrot.slane %v58_v33, %v74_v37  ;;  %v79_v54 = vrot.slane %v58_v33, %v78_v42  ;;  %v83_v61 = vrot.slane %v58_v33, %v82_v47  ;;  %v87_v2 = vrot.slane %v58_v33, %v86_v51 }
   0xa   :  { %3285 = vmatmul.mubr.msk.bf16.vlgmr.msra.gmra.mxu0 %vm140_vm0, %v49_v4  ;;  %282 = vmatpush1.bf16.msra.mxu1 %v3283_v18  ;;  %v91_v8 = vrot.slane %v58_v33, %v90_v59  ;;  %p4267_p4 = pnand %p4266_p3, %p4260_p0 }
   0xb   :  { %241 = vmatpush1.bf16.msra.mxu0 %v3281_v14  ;;  %258 = vmatprep.mubr.bf16.mxu0 %v4273_v3 }
   0xc   :  { %3723 = vmatprep.subr.bf16.mxu0 %v4275_v19  ;;  %299 = vmatprep.mubr.bf16.mxu1 %v4273_v3 }
   0xd   :  { %3729 = vmatprep.subr.bf16.mxu1 %v4275_v19 }
  0x11   :  { %3288 = vmatmul.mubr.msk.bf16.vlgmr.msra.gmra.mxu1 %vm140_vm0, %v49_v4 }
  0x12   :  { %3287 = vmatmul.mubr.msk.bf16.vlgmr.msra.gmra.mxu0 %vm140_vm0, %v49_v4  ;;  %3730 = vmatpush3.bf16.msra.mxu1 %v3775_v21 }
  0x13   :  { %3724 = vmatpush3.bf16.msra.mxu0 %v3774_v20  ;;  %3725 = vmatprep.mubr.msk.bf16.mxu0 %vm4276_vm1, %v4275_v19 }
  0x14   :  { %3745 = vmatprep.mubr.msk.bf16.mxu1 %vm4276_vm1, %v4275_v19  ;;  %3731 = vmatprep.subr.bf16.mxu1 %v4275_v19 }
  0x16   :  { %3732 = vmatpush3.bf16.msra.mxu1 %v3776_v22 }
  0x17   :  { %3733 = vmatprep.subr.bf16.mxu1 %v4275_v19 }
  0x1a   :  { %3734 = vmatpush3.bf16.msra.mxu1 %v3777_v23 }
  0x1b   :  { %3735 = vmatprep.subr.bf16.mxu1 %v4275_v19 }
  0x1e   :  { %3736 = vmatpush3.bf16.msra.mxu1 %v3778_v24 }
  0x1f   :  { %3737 = vmatprep.subr.bf16.mxu1 %v4275_v19 }
  0x22   :  { %3738 = vmatpush3.bf16.msra.mxu1 %v3779_v25 }
  0x23   :  { %3739 = vmatprep.subr.bf16.mxu1 %v4275_v19 }
  0x26   :  { %3740 = vmatpush3.bf16.msra.mxu1 %v3780_v26 }
  0x27   :  { %3741 = vmatprep.subr.bf16.mxu1 %v4275_v19 }
  0x2a   :  { %3742 = vmatpush3.bf16.msra.mxu1 %v3781_v28 }
  0x2b   :  { %3743 = vmatprep.subr.bf16.mxu1 %v4275_v19 }
  0x2e   :  { %3744 = vmatpush3.bf16.msra.mxu1 %v3782_v30 }
  0x76   :  { %v335_v27 = vpop.permute.xlu0 %334 }
  0x77   :  { %3726 = vmatmul.mubr.msk.bf16.vlgmr.msra.gmra.mxu0 %vm140_vm0, %v335_v27  ;;  %v3289_v27 = vld [vmem:[%s4757_s10 + $0xd] ss:$0 sm:$0xff] }
  0xc9   :  { %v219_v48 = vpop.f32.mrf.mxu1 }
  0xca   :  { %v178_v39 = vpop.f32.mrf.mxu0  ;;  %v220_v50 = vadd.f32 %v219_v48, %v71_v40 }
  0xcb   :  { %v179_v41 = vadd.f32 %v178_v39, %v63_v36  ;;  %v221_v55 = vpop.f32.mrf.mxu1 }
  0xcc   :  { %v180_v43 = vpop.f32.mrf.mxu0  ;;  %v310_v57 = vmax.f32 %v220_v50, 0.0  ;;  %v222_v58 = vadd.f32 %v221_v55, %v75_v44 }
  0xcd   :  { %v308_v45 = vmax.f32 %v179_v41, 0.0  ;;  %v181_v46 = vadd.f32 %v180_v43, %v67_v38  ;;  %v223_v62 = vpop.f32.mrf.mxu1 }
  0xce   :  { %v182_v49 = vpop.f32.mrf.mxu0  ;;  %v4441_v0 = vpack.c.bf16 %v310_v57, %v310_v57  ;;  %v311_v1 = vmax.f32 %v222_v58, 0.0 }
  0xcf   :  { %v4436_v52 = vpack.c.bf16 %v308_v45, %v308_v45  ;;  %v309_v53 = vmax.f32 %v181_v46, 0.0  ;;  %v224_v5 = vpop.f32.mrf.mxu1 }
  0xd0   :  { %v183_v56 = vpop.f32.mrf.mxu0  ;;  %v4443_v7 = vpack.c.bf16 %v311_v1, %v311_v1 }
  0xd1   :  { %v4439_v60 = vpack.c.bf16 %v309_v53, %v309_v53  ;;  %v301_v11 = vpop.f32.mrf.mxu1 }
  0xd2   :  { %v260_v63 = vpop.f32.mrf.mxu0  ;;  %v302_v13 = vadd.f32 %v301_v11, %v87_v2 }
  0xd3   :  { %v261_v4 = vadd.f32 %v260_v63, %v79_v54  ;;  %v303_v16 = vpop.f32.mrf.mxu1 }
  0xd4   :  { %v262_v6 = vpop.f32.mrf.mxu0  ;;  %v314_v18 = vmax.f32 %v302_v13, 0.0  ;;  %v304_v20 = vadd.f32 %v303_v16, %v91_v8 }
  0xd5   :  { %v312_v9 = vmax.f32 %v261_v4, 0.0  ;;  %v263_v10 = vadd.f32 %v262_v6, %v83_v61  ;;  %v305_v22 = vpop.f32.mrf.mxu1 }
  0xd6   :  { %v264_v12 = vpop.f32.mrf.mxu0  ;;  %v4449_v23 = vpack.c.bf16 %v314_v18, %v314_v18  ;;  %v315_v24 = vmax.f32 %v304_v20, 0.0 }
  0xd7   :  { %v4445_v14 = vpack.c.bf16 %v312_v9, %v312_v9  ;;  %v313_v15 = vmax.f32 %v263_v10, 0.0  ;;  %v306_v25 = vpop.f32.mrf.mxu1 }
  0xd8   :  { %v265_v17 = vpop.f32.mrf.mxu0  ;;  %v4451_v26 = vpack.c.bf16 %v315_v24, %v315_v24 }
  0xd9   :  { %v4447_v21 = vpack.c.bf16 %v313_v15, %v313_v15 }
 0x137   :  { %v379_v28 = vpop.f32.mrf.mxu0 }
 0x138   :  { %v380_v29 = vadd.f32 %v3289_v27, %v379_v28 }
 0x139   :  { %v3727_v30 = vpop.f32.mrf.mxu0 }
 0x13a   :  { %v385_v33 = vmax.f32 %v380_v29, 0.0 }
 0x13b   :  { %v382_v36 = vpop.f32.mrf.mxu0 }
 0x13c   :  { %v386_v38 = vpack.c.bf16 %v385_v33, %v385_v33 }
 0x13d   :  { %v3728_v39 = vpop.f32.mrf.mxu0 }
 0x13e   :  { %3746 = vmatmul.mubr.bf16.vlgmr.msra.gmra.mxu1 %v386_v38 }
 0x13f   :  { %4270 = shalt.err (!%p4267_p4)  }
 0x140   :  { %47 = dma.hbm_to_vmem [thread:$0]  %s4758_s2, 32768, %s45_s1, [#allocation3]  ;;  %v3292_v40 = vld [vmem:[%s4757_s10 + $0xe] ss:$0 sm:$0xff] }
 0x1fe   :  { %v492_v41 = vpop.f32.mrf.mxu1 }
 0x1ff   :  { %v493_v42 = vadd.f32 %v3292_v40, %v492_v41 }
 0x200   :  { %v3747_v43 = vpop.f32.mrf.mxu1 }
 0x201   :  { %v498_v44 = vmax.f32 %v493_v42, 0.0 }
 0x202   :  { %v495_v45 = vpop.f32.mrf.mxu1 }
 0x203   :  { %v4462_v46 = vpack.c.bf16 %v498_v44, %v498_v44 }
 0x204   :  { %v3748_v47 = vpop.f32.mrf.mxu1 }
 0x205   :  { %4271 = dma.done.wait [#allocation3], 32768 }
 0x206   :  { %4272 = vsyncadd [#allocation3], 4294934528  ;;  %2094 = vmatprep.mubr.bf16.mxu0 %v4439_v60  ;;  %2135 = vmatprep.mubr.bf16.mxu1 %v4443_v7  ;;  %v3783_v48 = vld [vmem:[#allocation2 + $0xe4] ss:$16 sps:$4 sm:$0xff]   ;;  %v3787_v50 = vld [vmem:[#allocation2 + $0xe0] ss:$16 sps:$4 sm:$0xff]  }
 0x207   :  { %v3785_v49 = vld [vmem:[#allocation2 + $0x2e4] ss:$16 sps:$4 sm:$0xff]   ;;  %2062 = vmatprep.subr.bf16.mxu0 %v3783_v48  ;;  %v3788_v51 = vld [vmem:[#allocation2 + $0x2e0] ss:$16 sps:$4 sm:$0xff]   ;;  %vm2799_vm2 = vcmask 523264   ;;  %vm3265_vm3 = vcmask 7168  }
 0x208   :  { %2103 = vmatprep.subr.bf16.mxu1 %v3785_v49  ;;  %v3789_v53 = vld [vmem:[#allocation2 + $0xc4] ss:$16 sps:$4 sm:$0xff]   ;;  %2063 = vmatpush1.bf16.msra.mxu0 %v3787_v50  ;;  %v3793_v55 = vld [vmem:[#allocation2 + $0xc0] ss:$16 sps:$4 sm:$0xff]  }
 0x209   :  { %2104 = vmatpush1.bf16.msra.mxu1 %v3788_v51  ;;  %v3791_v54 = vld [vmem:[#allocation2 + $0x2c4] ss:$16 sps:$4 sm:$0xff]   ;;  %2064 = vmatprep.subr.bf16.mxu0 %v3789_v53  ;;  %v3794_v56 = vld [vmem:[#allocation2 + $0x2c0] ss:$16 sps:$4 sm:$0xff]  }
 0x20a   :  { %2105 = vmatprep.subr.bf16.mxu1 %v3791_v54  ;;  %v3795_v57 = vld [vmem:[#allocation2 + $0xa4] ss:$16 sps:$4 sm:$0xff]   ;;  %v3799_v59 = vld [vmem:[#allocation2 + $0xa0] ss:$16 sps:$4 sm:$0xff]  }
 0x20b   :  { %v3797_v58 = vld [vmem:[#allocation2 + $0x2a4] ss:$16 sps:$4 sm:$0xff]   ;;  %v3800_v61 = vld [vmem:[#allocation2 + $0x2a0] ss:$16 sps:$4 sm:$0xff]  }
 0x20c   :  { %2065 = vmatpush1.bf16.msra.mxu0 %v3793_v55  ;;  %v3801_v62 = vld [vmem:[#allocation2 + $0x84] ss:$16 sps:$4 sm:$0xff]   ;;  %v3805_v1 = vld [vmem:[#allocation2 + $0x80] ss:$16 sps:$4 sm:$0xff]  }
 0x20d   :  { %2106 = vmatpush1.bf16.msra.mxu1 %v3794_v56  ;;  %2066 = vmatprep.subr.bf16.mxu0 %v3795_v57  ;;  %v3803_v63 = vld [vmem:[#allocation2 + $0x284] ss:$16 sps:$4 sm:$0xff]   ;;  %v3806_v2 = vld [vmem:[#allocation2 + $0x280] ss:$16 sps:$4 sm:$0xff]  }
 0x20e   :  { %2107 = vmatprep.subr.bf16.mxu1 %v3797_v58  ;;  %v3807_v4 = vld [vmem:[#allocation2 + $0x64] ss:$16 sps:$4 sm:$0xff]   ;;  %v3811_v6 = vld [vmem:[#allocation2 + $0x60] ss:$16 sps:$4 sm:$0xff]  }
 0x20f   :  { %v3809_v5 = vld [vmem:[#allocation2 + $0x264] ss:$16 sps:$4 sm:$0xff]   ;;  %v3812_v8 = vld [vmem:[#allocation2 + $0x260] ss:$16 sps:$4 sm:$0xff]  }
 0x210   :  { %2067 = vmatpush1.bf16.msra.mxu0 %v3799_v59  ;;  %v3813_v9 = vld [vmem:[#allocation2 + $0x44] ss:$16 sps:$4 sm:$0xff]   ;;  %v3817_v11 = vld [vmem:[#allocation2 + $0x40] ss:$16 sps:$4 sm:$0xff]  }
 0x211   :  { %2108 = vmatpush1.bf16.msra.mxu1 %v3800_v61  ;;  %2068 = vmatprep.subr.bf16.mxu0 %v3801_v62  ;;  %v3815_v10 = vld [vmem:[#allocation2 + $0x244] ss:$16 sps:$4 sm:$0xff]   ;;  %v3818_v12 = vld [vmem:[#allocation2 + $0x240] ss:$16 sps:$4 sm:$0xff]  }
 0x212   :  { %2109 = vmatprep.subr.bf16.mxu1 %v3803_v63  ;;  %v3819_v13 = vld [vmem:[#allocation2 + $0x24] ss:$16 sps:$4 sm:$0xff]   ;;  %v3823_v16 = vld [vmem:[#allocation2 + $0x20] ss:$16 sps:$4 sm:$0xff]  }
 0x213   :  { %v3821_v15 = vld [vmem:[#allocation2 + $0x224] ss:$16 sps:$4 sm:$0xff]   ;;  %v3824_v17 = vld [vmem:[#allocation2 + $0x220] ss:$16 sps:$4 sm:$0xff]  }
 0x214   :  { %2069 = vmatpush1.bf16.msra.mxu0 %v3805_v1  ;;  %v3825_v18 = vld [vmem:[#allocation2 + $0x4] ss:$16 sps:$4 sm:$0xff]   ;;  %v3829_v22 = vld [vmem:[#allocation2] ss:$16 sps:$4 sm:$0xff]  }
 0x215   :  { %2110 = vmatpush1.bf16.msra.mxu1 %v3806_v2  ;;  %2070 = vmatprep.subr.bf16.mxu0 %v3807_v4  ;;  %v3827_v20 = vld [vmem:[#allocation2 + $0x204] ss:$16 sps:$4 sm:$0xff]   ;;  %v3830_v24 = vld [vmem:[#allocation2 + $0x200] ss:$16 sps:$4 sm:$0xff]  }
 0x216   :  { %2111 = vmatprep.subr.bf16.mxu1 %v3809_v5  ;;  %v3831_v25 = vld [vmem:[#allocation2 + $0x1e4] ss:$16 sps:$4 sm:$0xff]   ;;  %v3835_v28 = vld [vmem:[#allocation2 + $0x1e0] ss:$16 sps:$4 sm:$0xff]  }
 0x217   :  { %v3833_v27 = vld [vmem:[#allocation2 + $0x3e4] ss:$16 sps:$4 sm:$0xff]   ;;  %v3836_v29 = vld [vmem:[#allocation2 + $0x3e0] ss:$16 sps:$4 sm:$0xff]  }
 0x218   :  { %2071 = vmatpush1.bf16.msra.mxu0 %v3811_v6  ;;  %v3837_v30 = vld [vmem:[#allocation2 + $0x1c4] ss:$16 sps:$4 sm:$0xff]   ;;  %v3841_v36 = vld [vmem:[#allocation2 + $0x1c0] ss:$16 sps:$4 sm:$0xff]  }
 0x219   :  { %2112 = vmatpush1.bf16.msra.mxu1 %v3812_v8  ;;  %2072 = vmatprep.subr.bf16.mxu0 %v3813_v9  ;;  %v3839_v33 = vld [vmem:[#allocation2 + $0x3c4] ss:$16 sps:$4 sm:$0xff]   ;;  %v3842_v38 = vld [vmem:[#allocation2 + $0x3c0] ss:$16 sps:$4 sm:$0xff]  }
 0x21a   :  { %2113 = vmatprep.subr.bf16.mxu1 %v3815_v10  ;;  %v3843_v39 = vld [vmem:[#allocation2 + $0x1a4] ss:$16 sps:$4 sm:$0xff]   ;;  %v3847_v41 = vld [vmem:[#allocation2 + $0x1a0] ss:$16 sps:$4 sm:$0xff]  }
 0x21b   :  { %v3845_v40 = vld [vmem:[#allocation2 + $0x3a4] ss:$16 sps:$4 sm:$0xff]   ;;  %v3848_v42 = vld [vmem:[#allocation2 + $0x3a0] ss:$16 sps:$4 sm:$0xff]  }
 0x21c   :  { %2073 = vmatpush1.bf16.msra.mxu0 %v3817_v11  ;;  %v3849_v43 = vld [vmem:[#allocation2 + $0x184] ss:$16 sps:$4 sm:$0xff]   ;;  %v3853_v45 = vld [vmem:[#allocation2 + $0x180] ss:$16 sps:$4 sm:$0xff]  }
 0x21d   :  { %2114 = vmatpush1.bf16.msra.mxu1 %v3818_v12  ;;  %2074 = vmatprep.subr.bf16.mxu0 %v3819_v13  ;;  %v3851_v44 = vld [vmem:[#allocation2 + $0x384] ss:$16 sps:$4 sm:$0xff]   ;;  %v3854_v47 = vld [vmem:[#allocation2 + $0x380] ss:$16 sps:$4 sm:$0xff]  }
 0x21e   :  { %2115 = vmatprep.subr.bf16.mxu1 %v3821_v15  ;;  %v3855_v48 = vld [vmem:[#allocation2 + $0x164] ss:$16 sps:$4 sm:$0xff]   ;;  %v3859_v50 = vld [vmem:[#allocation2 + $0x160] ss:$16 sps:$4 sm:$0xff]  }
 0x21f   :  { %v3857_v49 = vld [vmem:[#allocation2 + $0x364] ss:$16 sps:$4 sm:$0xff]   ;;  %v3860_v51 = vld [vmem:[#allocation2 + $0x360] ss:$16 sps:$4 sm:$0xff]  }
 0x220   :  { %2075 = vmatpush1.bf16.msra.mxu0 %v3823_v16  ;;  %v3861_v53 = vld [vmem:[#allocation2 + $0x144] ss:$16 sps:$4 sm:$0xff]   ;;  %v3865_v55 = vld [vmem:[#allocation2 + $0x140] ss:$16 sps:$4 sm:$0xff]  }
 0x221   :  { %2116 = vmatpush1.bf16.msra.mxu1 %v3824_v17  ;;  %2076 = vmatprep.subr.bf16.mxu0 %v3825_v18  ;;  %v3863_v54 = vld [vmem:[#allocation2 + $0x344] ss:$16 sps:$4 sm:$0xff]   ;;  %v3866_v56 = vld [vmem:[#allocation2 + $0x340] ss:$16 sps:$4 sm:$0xff]  }
 0x222   :  { %2117 = vmatprep.subr.bf16.mxu1 %v3827_v20  ;;  %v3867_v57 = vld [vmem:[#allocation2 + $0x124] ss:$16 sps:$4 sm:$0xff]   ;;  %v3871_v59 = vld [vmem:[#allocation2 + $0x120] ss:$16 sps:$4 sm:$0xff]  }
 0x223   :  { %v3869_v58 = vld [vmem:[#allocation2 + $0x324] ss:$16 sps:$4 sm:$0xff]   ;;  %v3872_v61 = vld [vmem:[#allocation2 + $0x320] ss:$16 sps:$4 sm:$0xff]  }
 0x224   :  { %2077 = vmatpush1.bf16.msra.mxu0 %v3829_v22  ;;  %v3873_v62 = vld [vmem:[#allocation2 + $0x104] ss:$16 sps:$4 sm:$0xff]   ;;  %v3877_v1 = vld [vmem:[#allocation2 + $0x100] ss:$16 sps:$4 sm:$0xff]  }
 0x225   :  { %2118 = vmatpush1.bf16.msra.mxu1 %v3830_v24  ;;  %2078 = vmatprep.subr.bf16.mxu0 %v3831_v25  ;;  %v3875_v63 = vld [vmem:[#allocation2 + $0x304] ss:$16 sps:$4 sm:$0xff]   ;;  %v3878_v2 = vld [vmem:[#allocation2 + $0x300] ss:$16 sps:$4 sm:$0xff]  }
 0x226   :  { %2119 = vmatprep.subr.bf16.mxu1 %v3833_v27  ;;  %v3881_v4 = vld [vmem:[#allocation2 + $0x4e4] ss:$16 sps:$4 sm:$0xff]   ;;  %v3879_v6 = vld [vmem:[#allocation2 + $0x4e0] ss:$16 sps:$4 sm:$0xff]  }
 0x227   :  { %v3884_v5 = vld [vmem:[#allocation2 + $0x6e4] ss:$16 sps:$4 sm:$0xff]   ;;  %v3882_v8 = vld [vmem:[#allocation2 + $0x6e0] ss:$16 sps:$4 sm:$0xff]  }
 0x228   :  { %2079 = vmatpush2.bf16.msra.mxu0 %v3835_v28  ;;  %v3887_v9 = vld [vmem:[#allocation2 + $0x4c4] ss:$16 sps:$4 sm:$0xff]   ;;  %v3885_v11 = vld [vmem:[#allocation2 + $0x4c0] ss:$16 sps:$4 sm:$0xff]  }
 0x229   :  { %2120 = vmatpush2.bf16.msra.mxu1 %v3836_v29  ;;  %2080 = vmatprep.subr.bf16.mxu0 %v3837_v30  ;;  %v3890_v10 = vld [vmem:[#allocation2 + $0x6c4] ss:$16 sps:$4 sm:$0xff]   ;;  %v3888_v12 = vld [vmem:[#allocation2 + $0x6c0] ss:$16 sps:$4 sm:$0xff]  }
 0x22a   :  { %2121 = vmatprep.subr.bf16.mxu1 %v3839_v33  ;;  %v3893_v13 = vld [vmem:[#allocation2 + $0x4a4] ss:$16 sps:$4 sm:$0xff]   ;;  %v3891_v16 = vld [vmem:[#allocation2 + $0x4a0] ss:$16 sps:$4 sm:$0xff]  }
 0x22b   :  { %v3896_v15 = vld [vmem:[#allocation2 + $0x6a4] ss:$16 sps:$4 sm:$0xff]   ;;  %v3894_v17 = vld [vmem:[#allocation2 + $0x6a0] ss:$16 sps:$4 sm:$0xff]  }
 0x22c   :  { %2081 = vmatpush2.bf16.msra.mxu0 %v3841_v36  ;;  %v3899_v18 = vld [vmem:[#allocation2 + $0x484] ss:$16 sps:$4 sm:$0xff]   ;;  %v3897_v22 = vld [vmem:[#allocation2 + $0x480] ss:$16 sps:$4 sm:$0xff]  }
 0x22d   :  { %2122 = vmatpush2.bf16.msra.mxu1 %v3842_v38  ;;  %2082 = vmatprep.subr.bf16.mxu0 %v3843_v39  ;;  %v3902_v20 = vld [vmem:[#allocation2 + $0x684] ss:$16 sps:$4 sm:$0xff]   ;;  %v3900_v24 = vld [vmem:[#allocation2 + $0x680] ss:$16 sps:$4 sm:$0xff]  }
 0x22e   :  { %2123 = vmatprep.subr.bf16.mxu1 %v3845_v40  ;;  %v3905_v25 = vld [vmem:[#allocation2 + $0x464] ss:$16 sps:$4 sm:$0xff]   ;;  %v3903_v28 = vld [vmem:[#allocation2 + $0x460] ss:$16 sps:$4 sm:$0xff]  }
 0x22f   :  { %v3908_v27 = vld [vmem:[#allocation2 + $0x664] ss:$16 sps:$4 sm:$0xff]   ;;  %v3906_v29 = vld [vmem:[#allocation2 + $0x660] ss:$16 sps:$4 sm:$0xff]  }
 0x230   :  { %2083 = vmatpush2.bf16.msra.mxu0 %v3847_v41  ;;  %v3911_v30 = vld [vmem:[#allocation2 + $0x444] ss:$16 sps:$4 sm:$0xff]   ;;  %v3909_v36 = vld [vmem:[#allocation2 + $0x440] ss:$16 sps:$4 sm:$0xff]  }
 0x231   :  { %2124 = vmatpush2.bf16.msra.mxu1 %v3848_v42  ;;  %2084 = vmatprep.subr.bf16.mxu0 %v3849_v43  ;;  %v3914_v33 = vld [vmem:[#allocation2 + $0x644] ss:$16 sps:$4 sm:$0xff]   ;;  %v3912_v38 = vld [vmem:[#allocation2 + $0x640] ss:$16 sps:$4 sm:$0xff]  }
 0x232   :  { %2125 = vmatprep.subr.bf16.mxu1 %v3851_v44  ;;  %v3917_v39 = vld [vmem:[#allocation2 + $0x424] ss:$16 sps:$4 sm:$0xff]   ;;  %v3915_v41 = vld [vmem:[#allocation2 + $0x420] ss:$16 sps:$4 sm:$0xff]  }
 0x233   :  { %v3920_v40 = vld [vmem:[#allocation2 + $0x624] ss:$16 sps:$4 sm:$0xff]   ;;  %v3918_v42 = vld [vmem:[#allocation2 + $0x620] ss:$16 sps:$4 sm:$0xff]  }
 0x234   :  { %2085 = vmatpush2.bf16.msra.mxu0 %v3853_v45  ;;  %v3923_v43 = vld [vmem:[#allocation2 + $0x404] ss:$16 sps:$4 sm:$0xff]   ;;  %v3921_v45 = vld [vmem:[#allocation2 + $0x400] ss:$16 sps:$4 sm:$0xff]  }
 0x235   :  { %2126 = vmatpush2.bf16.msra.mxu1 %v3854_v47  ;;  %2086 = vmatprep.subr.bf16.mxu0 %v3855_v48  ;;  %v3926_v44 = vld [vmem:[#allocation2 + $0x604] ss:$16 sps:$4 sm:$0xff]   ;;  %v3924_v47 = vld [vmem:[#allocation2 + $0x600] ss:$16 sps:$4 sm:$0xff]  }
 0x236   :  { %2127 = vmatprep.subr.bf16.mxu1 %v3857_v49  ;;  %v3929_v48 = vld [vmem:[#allocation2 + $0x5e4] ss:$16 sps:$4 sm:$0xff]  }
 0x237   :  { %v3932_v49 = vld [vmem:[#allocation2 + $0x7e4] ss:$16 sps:$4 sm:$0xff]  }
 0x238   :  { %2087 = vmatpush2.bf16.msra.mxu0 %v3859_v50  ;;  %v3927_v50 = vld [vmem:[#allocation2 + $0x5e0] ss:$16 sps:$4 sm:$0xff]  }
 0x239   :  { %2128 = vmatpush2.bf16.msra.mxu1 %v3860_v51  ;;  %2088 = vmatprep.subr.bf16.mxu0 %v3861_v53  ;;  %v3930_v51 = vld [vmem:[#allocation2 + $0x7e0] ss:$16 sps:$4 sm:$0xff]   ;;  %v3935_v53 = vld [vmem:[#allocation2 + $0x5c4] ss:$16 sps:$4 sm:$0xff]  }
 0x23a   :  { %2129 = vmatprep.subr.bf16.mxu1 %v3863_v54  ;;  %v3938_v54 = vld [vmem:[#allocation2 + $0x7c4] ss:$16 sps:$4 sm:$0xff]  }
 0x23c   :  { %2089 = vmatpush2.bf16.msra.mxu0 %v3865_v55  ;;  %v3933_v55 = vld [vmem:[#allocation2 + $0x5c0] ss:$16 sps:$4 sm:$0xff]  }
 0x23d   :  { %2130 = vmatpush2.bf16.msra.mxu1 %v3866_v56  ;;  %2090 = vmatprep.subr.bf16.mxu0 %v3867_v57  ;;  %v3936_v56 = vld [vmem:[#allocation2 + $0x7c0] ss:$16 sps:$4 sm:$0xff]   ;;  %v3941_v57 = vld [vmem:[#allocation2 + $0x5a4] ss:$16 sps:$4 sm:$0xff]  }
 0x23e   :  { %2131 = vmatprep.subr.bf16.mxu1 %v3869_v58  ;;  %v3944_v58 = vld [vmem:[#allocation2 + $0x7a4] ss:$16 sps:$4 sm:$0xff]  }
 0x240   :  { %2091 = vmatpush2.bf16.msra.mxu0 %v3871_v59  ;;  %v3939_v59 = vld [vmem:[#allocation2 + $0x5a0] ss:$16 sps:$4 sm:$0xff]  }
 0x241   :  { %2132 = vmatpush2.bf16.msra.mxu1 %v3872_v61  ;;  %2092 = vmatprep.subr.bf16.mxu0 %v3873_v62  ;;  %v3942_v61 = vld [vmem:[#allocation2 + $0x7a0] ss:$16 sps:$4 sm:$0xff]   ;;  %v3947_v62 = vld [vmem:[#allocation2 + $0x584] ss:$16 sps:$4 sm:$0xff]  }
 0x242   :  { %2133 = vmatprep.subr.bf16.mxu1 %v3875_v63  ;;  %v3950_v63 = vld [vmem:[#allocation2 + $0x784] ss:$16 sps:$4 sm:$0xff]  }
 0x244   :  { %2093 = vmatpush2.bf16.msra.mxu0 %v3877_v1  ;;  %v3945_v1 = vld [vmem:[#allocation2 + $0x580] ss:$16 sps:$4 sm:$0xff]  }
 0x245   :  { %2134 = vmatpush2.bf16.msra.mxu1 %v3878_v2  ;;  %2144 = vmatprep.subr.bf16.mxu0 %v3881_v4  ;;  %v3948_v2 = vld [vmem:[#allocation2 + $0x780] ss:$16 sps:$4 sm:$0xff]   ;;  %v3953_v4 = vld [vmem:[#allocation2 + $0x564] ss:$16 sps:$4 sm:$0xff]  }
 0x246   :  { %2185 = vmatprep.subr.bf16.mxu1 %v3884_v5  ;;  %v3956_v5 = vld [vmem:[#allocation2 + $0x764] ss:$16 sps:$4 sm:$0xff]  }
 0x247   :  { %2095 = vmatmul.mubr.bf16.vlgmr.msra.gmra.mxu0 %v4436_v52 }
 0x248   :  { %2136 = vmatmul.mubr.bf16.vlgmr.msra.gmra.mxu1 %v4441_v0  ;;  %2145 = vmatpush1.bf16.msra.mxu0 %v3879_v6  ;;  %v3951_v6 = vld [vmem:[#allocation2 + $0x560] ss:$16 sps:$4 sm:$0xff]  }
 0x249   :  { %2186 = vmatpush1.bf16.msra.mxu1 %v3882_v8  ;;  %2146 = vmatprep.subr.bf16.mxu0 %v3887_v9  ;;  %v3954_v8 = vld [vmem:[#allocation2 + $0x760] ss:$16 sps:$4 sm:$0xff]   ;;  %v3959_v9 = vld [vmem:[#allocation2 + $0x544] ss:$16 sps:$4 sm:$0xff]  }
 0x24a   :  { %2187 = vmatprep.subr.bf16.mxu1 %v3890_v10  ;;  %2176 = vmatprep.mubr.bf16.mxu0 %v4447_v21  ;;  %v3962_v10 = vld [vmem:[#allocation2 + $0x744] ss:$16 sps:$4 sm:$0xff]  }
 0x24b   :  { %2217 = vmatprep.mubr.bf16.mxu1 %v4451_v26 }
 0x24c   :  { %2147 = vmatpush1.bf16.msra.mxu0 %v3885_v11  ;;  %v3957_v11 = vld [vmem:[#allocation2 + $0x540] ss:$16 sps:$4 sm:$0xff]  }
 0x24d   :  { %2188 = vmatpush1.bf16.msra.mxu1 %v3888_v12  ;;  %2148 = vmatprep.subr.bf16.mxu0 %v3893_v13  ;;  %v3960_v12 = vld [vmem:[#allocation2 + $0x740] ss:$16 sps:$4 sm:$0xff]   ;;  %v3965_v13 = vld [vmem:[#allocation2 + $0x524] ss:$16 sps:$4 sm:$0xff]  }
 0x24e   :  { %2189 = vmatprep.subr.bf16.mxu1 %v3896_v15  ;;  %v3968_v15 = vld [vmem:[#allocation2 + $0x724] ss:$16 sps:$4 sm:$0xff]  }
 0x250   :  { %2149 = vmatpush1.bf16.msra.mxu0 %v3891_v16  ;;  %v3963_v16 = vld [vmem:[#allocation2 + $0x520] ss:$16 sps:$4 sm:$0xff]  }
 0x251   :  { %2190 = vmatpush1.bf16.msra.mxu1 %v3894_v17  ;;  %2150 = vmatprep.subr.bf16.mxu0 %v3899_v18  ;;  %v3966_v17 = vld [vmem:[#allocation2 + $0x720] ss:$16 sps:$4 sm:$0xff]   ;;  %v3971_v18 = vld [vmem:[#allocation2 + $0x504] ss:$16 sps:$4 sm:$0xff]  }
 0x252   :  { %2191 = vmatprep.subr.bf16.mxu1 %v3902_v20  ;;  %v3974_v20 = vld [vmem:[#allocation2 + $0x704] ss:$16 sps:$4 sm:$0xff]  }
 0x254   :  { %2151 = vmatpush1.bf16.msra.mxu0 %v3897_v22  ;;  %v3969_v22 = vld [vmem:[#allocation2 + $0x500] ss:$16 sps:$4 sm:$0xff]  }
 0x255   :  { %2192 = vmatpush1.bf16.msra.mxu1 %v3900_v24  ;;  %2152 = vmatprep.subr.bf16.mxu0 %v3905_v25  ;;  %v3972_v24 = vld [vmem:[#allocation2 + $0x700] ss:$16 sps:$4 sm:$0xff]   ;;  %v3977_v25 = vld [vmem:[#allocation2 + $0xec] ss:$16 sps:$4 sm:$0xff]  }
 0x256   :  { %2193 = vmatprep.subr.bf16.mxu1 %v3908_v27  ;;  %v3980_v27 = vld [vmem:[#allocation2 + $0x2ec] ss:$16 sps:$4 sm:$0xff]  }
 0x258   :  { %2153 = vmatpush1.bf16.msra.mxu0 %v3903_v28  ;;  %v3975_v28 = vld [vmem:[#allocation2 + $0xe8] ss:$16 sps:$4 sm:$0xff]  }
 0x259   :  { %2194 = vmatpush1.bf16.msra.mxu1 %v3906_v29  ;;  %2154 = vmatprep.subr.bf16.mxu0 %v3911_v30  ;;  %v3978_v29 = vld [vmem:[#allocation2 + $0x2e8] ss:$16 sps:$4 sm:$0xff]   ;;  %v3983_v30 = vld [vmem:[#allocation2 + $0xcc] ss:$16 sps:$4 sm:$0xff]  }
 0x25a   :  { %2195 = vmatprep.subr.bf16.mxu1 %v3914_v33  ;;  %v3986_v33 = vld [vmem:[#allocation2 + $0x2cc] ss:$16 sps:$4 sm:$0xff]  }
 0x25c   :  { %2155 = vmatpush1.bf16.msra.mxu0 %v3909_v36  ;;  %v3981_v36 = vld [vmem:[#allocation2 + $0xc8] ss:$16 sps:$4 sm:$0xff]  }
 0x25d   :  { %2196 = vmatpush1.bf16.msra.mxu1 %v3912_v38  ;;  %2156 = vmatprep.subr.bf16.mxu0 %v3917_v39  ;;  %v3984_v38 = vld [vmem:[#allocation2 + $0x2c8] ss:$16 sps:$4 sm:$0xff]   ;;  %v3989_v39 = vld [vmem:[#allocation2 + $0xac] ss:$16 sps:$4 sm:$0xff]  }
 0x25e   :  { %2197 = vmatprep.subr.bf16.mxu1 %v3920_v40  ;;  %v3992_v40 = vld [vmem:[#allocation2 + $0x2ac] ss:$16 sps:$4 sm:$0xff]  }
 0x260   :  { %2157 = vmatpush1.bf16.msra.mxu0 %v3915_v41  ;;  %v3987_v41 = vld [vmem:[#allocation2 + $0xa8] ss:$16 sps:$4 sm:$0xff]  }
 0x261   :  { %2198 = vmatpush1.bf16.msra.mxu1 %v3918_v42  ;;  %2158 = vmatprep.subr.bf16.mxu0 %v3923_v43  ;;  %v3990_v42 = vld [vmem:[#allocation2 + $0x2a8] ss:$16 sps:$4 sm:$0xff]   ;;  %v3995_v43 = vld [vmem:[#allocation2 + $0x8c] ss:$16 sps:$4 sm:$0xff]  }
 0x262   :  { %2199 = vmatprep.subr.bf16.mxu1 %v3926_v44  ;;  %v3998_v44 = vld [vmem:[#allocation2 + $0x28c] ss:$16 sps:$4 sm:$0xff]  }
 0x264   :  { %2159 = vmatpush1.bf16.msra.mxu0 %v3921_v45  ;;  %v3993_v45 = vld [vmem:[#allocation2 + $0x88] ss:$16 sps:$4 sm:$0xff]  }
 0x265   :  { %2200 = vmatpush1.bf16.msra.mxu1 %v3924_v47  ;;  %2160 = vmatprep.subr.bf16.mxu0 %v3929_v48  ;;  %v3996_v47 = vld [vmem:[#allocation2 + $0x288] ss:$16 sps:$4 sm:$0xff]   ;;  %v4001_v48 = vld [vmem:[#allocation2 + $0x6c] ss:$16 sps:$4 sm:$0xff]  }
 0x266   :  { %2201 = vmatprep.subr.bf16.mxu1 %v3932_v49  ;;  %v4004_v49 = vld [vmem:[#allocation2 + $0x26c] ss:$16 sps:$4 sm:$0xff]  }
 0x268   :  { %2161 = vmatpush2.bf16.msra.mxu0 %v3927_v50  ;;  %v3999_v50 = vld [vmem:[#allocation2 + $0x68] ss:$16 sps:$4 sm:$0xff]  }
 0x269   :  { %2202 = vmatpush2.bf16.msra.mxu1 %v3930_v51  ;;  %2162 = vmatprep.subr.bf16.mxu0 %v3935_v53  ;;  %v4010_v51 = vld [vmem:[#allocation2 + $0x24c] ss:$16 sps:$4 sm:$0xff]   ;;  %v4005_v53 = vld [vmem:[#allocation2 + $0x48] ss:$16 sps:$4 sm:$0xff]  }
 0x26a   :  { %2203 = vmatprep.subr.bf16.mxu1 %v3938_v54  ;;  %v4008_v54 = vld [vmem:[#allocation2 + $0x248] ss:$16 sps:$4 sm:$0xff]  }
 0x26c   :  { %2163 = vmatpush2.bf16.msra.mxu0 %v3933_v55  ;;  %v4013_v55 = vld [vmem:[#allocation2 + $0x2c] ss:$16 sps:$4 sm:$0xff]  }
 0x26d   :  { %2204 = vmatpush2.bf16.msra.mxu1 %v3936_v56  ;;  %2164 = vmatprep.subr.bf16.mxu0 %v3941_v57  ;;  %v4016_v56 = vld [vmem:[#allocation2 + $0x22c] ss:$16 sps:$4 sm:$0xff]   ;;  %v4011_v57 = vld [vmem:[#allocation2 + $0x28] ss:$16 sps:$4 sm:$0xff]  }
 0x26e   :  { %2205 = vmatprep.subr.bf16.mxu1 %v3944_v58  ;;  %v4014_v58 = vld [vmem:[#allocation2 + $0x228] ss:$16 sps:$4 sm:$0xff]  }
 0x270   :  { %2165 = vmatpush2.bf16.msra.mxu0 %v3939_v59  ;;  %v4019_v59 = vld [vmem:[#allocation2 + $0xc] ss:$16 sps:$4 sm:$0xff]  }
 0x271   :  { %2206 = vmatpush2.bf16.msra.mxu1 %v3942_v61  ;;  %2166 = vmatprep.subr.bf16.mxu0 %v3947_v62  ;;  %v4022_v61 = vld [vmem:[#allocation2 + $0x20c] ss:$16 sps:$4 sm:$0xff]   ;;  %v4017_v62 = vld [vmem:[#allocation2 + $0x8] ss:$16 sps:$4 sm:$0xff]  }
 0x272   :  { %2207 = vmatprep.subr.bf16.mxu1 %v3950_v63  ;;  %v4020_v63 = vld [vmem:[#allocation2 + $0x208] ss:$16 sps:$4 sm:$0xff]  }
 0x274   :  { %2167 = vmatpush2.bf16.msra.mxu0 %v3945_v1  ;;  %v4025_v1 = vld [vmem:[#allocation2 + $0x1ec] ss:$16 sps:$4 sm:$0xff]  }
 0x275   :  { %2208 = vmatpush2.bf16.msra.mxu1 %v3948_v2  ;;  %2168 = vmatprep.subr.bf16.mxu0 %v3953_v4  ;;  %v4028_v2 = vld [vmem:[#allocation2 + $0x3ec] ss:$16 sps:$4 sm:$0xff]   ;;  %v4023_v4 = vld [vmem:[#allocation2 + $0x1e8] ss:$16 sps:$4 sm:$0xff]  }
 0x276   :  { %2209 = vmatprep.subr.bf16.mxu1 %v3956_v5  ;;  %v4026_v5 = vld [vmem:[#allocation2 + $0x3e8] ss:$16 sps:$4 sm:$0xff]  }
 0x278   :  { %2169 = vmatpush2.bf16.msra.mxu0 %v3951_v6  ;;  %v4031_v6 = vld [vmem:[#allocation2 + $0x1cc] ss:$16 sps:$4 sm:$0xff]  }
 0x279   :  { %2210 = vmatpush2.bf16.msra.mxu1 %v3954_v8  ;;  %2170 = vmatprep.subr.bf16.mxu0 %v3959_v9  ;;  %v4034_v8 = vld [vmem:[#allocation2 + $0x3cc] ss:$16 sps:$4 sm:$0xff]   ;;  %v4029_v9 = vld [vmem:[#allocation2 + $0x1c8] ss:$16 sps:$4 sm:$0xff]  }
 0x27a   :  { %2211 = vmatprep.subr.bf16.mxu1 %v3962_v10  ;;  %v4032_v10 = vld [vmem:[#allocation2 + $0x3c8] ss:$16 sps:$4 sm:$0xff]  }
 0x27c   :  { %2171 = vmatpush2.bf16.msra.mxu0 %v3957_v11  ;;  %v4037_v11 = vld [vmem:[#allocation2 + $0x1ac] ss:$16 sps:$4 sm:$0xff]  }
 0x27d   :  { %2212 = vmatpush2.bf16.msra.mxu1 %v3960_v12  ;;  %2172 = vmatprep.subr.bf16.mxu0 %v3965_v13  ;;  %v4040_v12 = vld [vmem:[#allocation2 + $0x3ac] ss:$16 sps:$4 sm:$0xff]   ;;  %v4035_v13 = vld [vmem:[#allocation2 + $0x1a8] ss:$16 sps:$4 sm:$0xff]  }
 0x27e   :  { %2213 = vmatprep.subr.bf16.mxu1 %v3968_v15  ;;  %v4038_v15 = vld [vmem:[#allocation2 + $0x3a8] ss:$16 sps:$4 sm:$0xff]  }
 0x280   :  { %2173 = vmatpush2.bf16.msra.mxu0 %v3963_v16  ;;  %v4043_v16 = vld [vmem:[#allocation2 + $0x18c] ss:$16 sps:$4 sm:$0xff]  }
 0x281   :  { %2214 = vmatpush2.bf16.msra.mxu1 %v3966_v17  ;;  %2174 = vmatprep.subr.bf16.mxu0 %v3971_v18  ;;  %v4046_v17 = vld [vmem:[#allocation2 + $0x38c] ss:$16 sps:$4 sm:$0xff]   ;;  %v4041_v18 = vld [vmem:[#allocation2 + $0x188] ss:$16 sps:$4 sm:$0xff]  }
 0x282   :  { %2215 = vmatprep.subr.bf16.mxu1 %v3974_v20  ;;  %v4044_v20 = vld [vmem:[#allocation2 + $0x388] ss:$16 sps:$4 sm:$0xff]  }
 0x284   :  { %2175 = vmatpush2.bf16.msra.mxu0 %v3969_v22  ;;  %v4049_v22 = vld [vmem:[#allocation2 + $0x16c] ss:$16 sps:$4 sm:$0xff]  }
 0x285   :  { %2216 = vmatpush2.bf16.msra.mxu1 %v3972_v24  ;;  %2226 = vmatprep.subr.bf16.mxu0 %v3977_v25  ;;  %v4052_v24 = vld [vmem:[#allocation2 + $0x36c] ss:$16 sps:$4 sm:$0xff]   ;;  %v4047_v25 = vld [vmem:[#allocation2 + $0x168] ss:$16 sps:$4 sm:$0xff]  }
 0x286   :  { %2267 = vmatprep.subr.bf16.mxu1 %v3980_v27  ;;  %v4050_v27 = vld [vmem:[#allocation2 + $0x368] ss:$16 sps:$4 sm:$0xff]  }
 0x287   :  { %2177 = vmatmul.mubr.bf16.vlgmr.msra.gmra.mxu0 %v4445_v14 }
 0x288   :  { %2218 = vmatmul.mubr.bf16.vlgmr.msra.gmra.mxu1 %v4449_v23  ;;  %2227 = vmatpush1.bf16.msra.mxu0 %v3975_v28  ;;  %v4055_v28 = vld [vmem:[#allocation2 + $0x14c] ss:$16 sps:$4 sm:$0xff]  }
 0x289   :  { %2268 = vmatpush1.bf16.msra.mxu1 %v3978_v29  ;;  %2228 = vmatprep.subr.bf16.mxu0 %v3983_v30  ;;  %v4058_v29 = vld [vmem:[#allocation2 + $0x34c] ss:$16 sps:$4 sm:$0xff]   ;;  %v4053_v30 = vld [vmem:[#allocation2 + $0x148] ss:$16 sps:$4 sm:$0xff]  }
 0x28a   :  { %2269 = vmatprep.subr.bf16.mxu1 %v3986_v33  ;;  %2258 = vmatprep.mubr.bf16.mxu0 %v4439_v60  ;;  %v4002_v60 = vld [vmem:[#allocation2 + $0x268] ss:$16 sps:$4 sm:$0xff]  }
 0x28b   :  { %2299 = vmatprep.mubr.bf16.mxu1 %v4443_v7  ;;  %v4007_v7 = vld [vmem:[#allocation2 + $0x4c] ss:$16 sps:$4 sm:$0xff]   ;;  %v4056_v33 = vld [vmem:[#allocation2 + $0x348] ss:$16 sps:$4 sm:$0xff]  }
 0x28c   :  { %2229 = vmatpush1.bf16.msra.mxu0 %v3981_v36  ;;  %v4061_v36 = vld [vmem:[#allocation2 + $0x12c] ss:$16 sps:$4 sm:$0xff]  }
 0x28d   :  { %2270 = vmatpush1.bf16.msra.mxu1 %v3984_v38  ;;  %2230 = vmatprep.subr.bf16.mxu0 %v3989_v39  ;;  %v4064_v38 = vld [vmem:[#allocation2 + $0x32c] ss:$16 sps:$4 sm:$0xff]   ;;  %v4059_v39 = vld [vmem:[#allocation2 + $0x128] ss:$16 sps:$4 sm:$0xff]  }
 0x28e   :  { %2271 = vmatprep.subr.bf16.mxu1 %v3992_v40  ;;  %v4062_v40 = vld [vmem:[#allocation2 + $0x328] ss:$16 sps:$4 sm:$0xff]  }
 0x290   :  { %2231 = vmatpush1.bf16.msra.mxu0 %v3987_v41  ;;  %v4067_v41 = vld [vmem:[#allocation2 + $0x10c] ss:$16 sps:$4 sm:$0xff]  }
 0x291   :  { %2272 = vmatpush1.bf16.msra.mxu1 %v3990_v42  ;;  %2232 = vmatprep.subr.bf16.mxu0 %v3995_v43  ;;  %v4070_v42 = vld [vmem:[#allocation2 + $0x30c] ss:$16 sps:$4 sm:$0xff]   ;;  %v4065_v43 = vld [vmem:[#allocation2 + $0x108] ss:$16 sps:$4 sm:$0xff]  }
 0x292   :  { %2273 = vmatprep.subr.bf16.mxu1 %v3998_v44  ;;  %v4068_v44 = vld [vmem:[#allocation2 + $0x308] ss:$16 sps:$4 sm:$0xff]  }
 0x294   :  { %2233 = vmatpush1.bf16.msra.mxu0 %v3993_v45  ;;  %v4073_v45 = vld [vmem:[#allocation2 + $0x4ec] ss:$16 sps:$4 sm:$0xff]  }
 0x295   :  { %2274 = vmatpush1.bf16.msra.mxu1 %v3996_v47  ;;  %2234 = vmatprep.subr.bf16.mxu0 %v4001_v48  ;;  %v4076_v47 = vld [vmem:[#allocation2 + $0x6ec] ss:$16 sps:$4 sm:$0xff]   ;;  %v4071_v48 = vld [vmem:[#allocation2 + $0x4e8] ss:$16 sps:$4 sm:$0xff]  }
 0x296   :  { %2275 = vmatprep.subr.bf16.mxu1 %v4004_v49  ;;  %v4074_v49 = vld [vmem:[#allocation2 + $0x6e8] ss:$16 sps:$4 sm:$0xff]  }
 0x298   :  { %2235 = vmatpush1.bf16.msra.mxu0 %v3999_v50  ;;  %v4079_v50 = vld [vmem:[#allocation2 + $0x4cc] ss:$16 sps:$4 sm:$0xff]  }
 0x299   :  { %2276 = vmatpush1.bf16.msra.mxu1 %v4002_v60  ;;  %2236 = vmatprep.subr.bf16.mxu0 %v4007_v7  ;;  %v4082_v60 = vld [vmem:[#allocation2 + $0x6cc] ss:$16 sps:$4 sm:$0xff]   ;;  %v4077_v7 = vld [vmem:[#allocation2 + $0x4c8] ss:$16 sps:$4 sm:$0xff]  }
 0x29a   :  { %2277 = vmatprep.subr.bf16.mxu1 %v4010_v51  ;;  %v4080_v51 = vld [vmem:[#allocation2 + $0x6c8] ss:$16 sps:$4 sm:$0xff]  }
 0x29c   :  { %2237 = vmatpush1.bf16.msra.mxu0 %v4005_v53  ;;  %v4085_v53 = vld [vmem:[#allocation2 + $0x4ac] ss:$16 sps:$4 sm:$0xff]  }
 0x29d   :  { %2278 = vmatpush1.bf16.msra.mxu1 %v4008_v54  ;;  %2238 = vmatprep.subr.bf16.mxu0 %v4013_v55  ;;  %v4088_v54 = vld [vmem:[#allocation2 + $0x6ac] ss:$16 sps:$4 sm:$0xff]   ;;  %v4083_v55 = vld [vmem:[#allocation2 + $0x4a8] ss:$16 sps:$4 sm:$0xff]  }
 0x29e   :  { %2279 = vmatprep.subr.bf16.mxu1 %v4016_v56  ;;  %v4086_v56 = vld [vmem:[#allocation2 + $0x6a8] ss:$16 sps:$4 sm:$0xff]  }
 0x2a0   :  { %2239 = vmatpush1.bf16.msra.mxu0 %v4011_v57  ;;  %v4091_v57 = vld [vmem:[#allocation2 + $0x48c] ss:$16 sps:$4 sm:$0xff]  }
 0x2a1   :  { %2280 = vmatpush1.bf16.msra.mxu1 %v4014_v58  ;;  %2240 = vmatprep.subr.bf16.mxu0 %v4019_v59  ;;  %v4089_v58 = vld [vmem:[#allocation2 + $0x488] ss:$16 sps:$4 sm:$0xff]   ;;  %v4097_v59 = vld [vmem:[#allocation2 + $0x46c] ss:$16 sps:$4 sm:$0xff]  }
 0x2a2   :  { %2281 = vmatprep.subr.bf16.mxu1 %v4022_v61  ;;  %v4100_v61 = vld [vmem:[#allocation2 + $0x66c] ss:$16 sps:$4 sm:$0xff]  }
 0x2a4   :  { %2241 = vmatpush1.bf16.msra.mxu0 %v4017_v62  ;;  %v4095_v62 = vld [vmem:[#allocation2 + $0x468] ss:$16 sps:$4 sm:$0xff]  }
 0x2a5   :  { %2282 = vmatpush1.bf16.msra.mxu1 %v4020_v63  ;;  %2242 = vmatprep.subr.bf16.mxu0 %v4025_v1  ;;  %v4098_v63 = vld [vmem:[#allocation2 + $0x668] ss:$16 sps:$4 sm:$0xff]   ;;  %v4103_v1 = vld [vmem:[#allocation2 + $0x44c] ss:$16 sps:$4 sm:$0xff]  }
 0x2a6   :  { %2283 = vmatprep.subr.bf16.mxu1 %v4028_v2  ;;  %v4104_v2 = vld [vmem:[#allocation2 + $0x648] ss:$16 sps:$4 sm:$0xff]  }
 0x2a8   :  { %2243 = vmatpush2.bf16.msra.mxu0 %v4023_v4  ;;  %v4109_v4 = vld [vmem:[#allocation2 + $0x42c] ss:$16 sps:$4 sm:$0xff]  }
 0x2a9   :  { %2284 = vmatpush2.bf16.msra.mxu1 %v4026_v5  ;;  %2244 = vmatprep.subr.bf16.mxu0 %v4031_v6  ;;  %v4112_v5 = vld [vmem:[#allocation2 + $0x62c] ss:$16 sps:$4 sm:$0xff]   ;;  %v4107_v6 = vld [vmem:[#allocation2 + $0x428] ss:$16 sps:$4 sm:$0xff]  }
 0x2aa   :  { %2285 = vmatprep.subr.bf16.mxu1 %v4034_v8  ;;  %v4110_v8 = vld [vmem:[#allocation2 + $0x628] ss:$16 sps:$4 sm:$0xff]  }
 0x2ac   :  { %2245 = vmatpush2.bf16.msra.mxu0 %v4029_v9  ;;  %v4115_v9 = vld [vmem:[#allocation2 + $0x40c] ss:$16 sps:$4 sm:$0xff]  }
 0x2ad   :  { %2286 = vmatpush2.bf16.msra.mxu1 %v4032_v10  ;;  %2246 = vmatprep.subr.bf16.mxu0 %v4037_v11  ;;  %v4118_v10 = vld [vmem:[#allocation2 + $0x60c] ss:$16 sps:$4 sm:$0xff]   ;;  %v4113_v11 = vld [vmem:[#allocation2 + $0x408] ss:$16 sps:$4 sm:$0xff]  }
 0x2ae   :  { %2287 = vmatprep.subr.bf16.mxu1 %v4040_v12  ;;  %v4116_v12 = vld [vmem:[#allocation2 + $0x608] ss:$16 sps:$4 sm:$0xff]  }
 0x2b0   :  { %2247 = vmatpush2.bf16.msra.mxu0 %v4035_v13  ;;  %v4121_v13 = vld [vmem:[#allocation2 + $0x5ec] ss:$16 sps:$4 sm:$0xff]  }
 0x2b1   :  { %2288 = vmatpush2.bf16.msra.mxu1 %v4038_v15  ;;  %2248 = vmatprep.subr.bf16.mxu0 %v4043_v16  ;;  %v4124_v15 = vld [vmem:[#allocation2 + $0x7ec] ss:$16 sps:$4 sm:$0xff]   ;;  %v4119_v16 = vld [vmem:[#allocation2 + $0x5e8] ss:$16 sps:$4 sm:$0xff]  }
 0x2b2   :  { %2289 = vmatprep.subr.bf16.mxu1 %v4046_v17  ;;  %v4122_v17 = vld [vmem:[#allocation2 + $0x7e8] ss:$16 sps:$4 sm:$0xff]  }
 0x2b4   :  { %2249 = vmatpush2.bf16.msra.mxu0 %v4041_v18  ;;  %v4127_v18 = vld [vmem:[#allocation2 + $0x5cc] ss:$16 sps:$4 sm:$0xff]  }
 0x2b5   :  { %2290 = vmatpush2.bf16.msra.mxu1 %v4044_v20  ;;  %2250 = vmatprep.subr.bf16.mxu0 %v4049_v22  ;;  %v4130_v20 = vld [vmem:[#allocation2 + $0x7cc] ss:$16 sps:$4 sm:$0xff]   ;;  %v4125_v22 = vld [vmem:[#allocation2 + $0x5c8] ss:$16 sps:$4 sm:$0xff]  }
 0x2b6   :  { %2291 = vmatprep.subr.bf16.mxu1 %v4052_v24  ;;  %v4128_v24 = vld [vmem:[#allocation2 + $0x7c8] ss:$16 sps:$4 sm:$0xff]  }
 0x2b8   :  { %2251 = vmatpush2.bf16.msra.mxu0 %v4047_v25  ;;  %v4133_v25 = vld [vmem:[#allocation2 + $0x5ac] ss:$16 sps:$4 sm:$0xff]  }
 0x2b9   :  { %2292 = vmatpush2.bf16.msra.mxu1 %v4050_v27  ;;  %2252 = vmatprep.subr.bf16.mxu0 %v4055_v28  ;;  %v4136_v27 = vld [vmem:[#allocation2 + $0x7ac] ss:$16 sps:$4 sm:$0xff]   ;;  %v4131_v28 = vld [vmem:[#allocation2 + $0x5a8] ss:$16 sps:$4 sm:$0xff]  }
 0x2ba   :  { %2293 = vmatprep.subr.bf16.mxu1 %v4058_v29  ;;  %v4134_v29 = vld [vmem:[#allocation2 + $0x7a8] ss:$16 sps:$4 sm:$0xff]  }
 0x2bc   :  { %2253 = vmatpush2.bf16.msra.mxu0 %v4053_v30  ;;  %v4139_v30 = vld [vmem:[#allocation2 + $0x58c] ss:$16 sps:$4 sm:$0xff]  }
 0x2bd   :  { %2294 = vmatpush2.bf16.msra.mxu1 %v4056_v33  ;;  %2254 = vmatprep.subr.bf16.mxu0 %v4061_v36  ;;  %v4142_v33 = vld [vmem:[#allocation2 + $0x78c] ss:$16 sps:$4 sm:$0xff]   ;;  %v4137_v36 = vld [vmem:[#allocation2 + $0x588] ss:$16 sps:$4 sm:$0xff]  }
 0x2be   :  { %2295 = vmatprep.subr.bf16.mxu1 %v4064_v38  ;;  %v4140_v38 = vld [vmem:[#allocation2 + $0x788] ss:$16 sps:$4 sm:$0xff]  }
 0x2c0   :  { %2255 = vmatpush2.bf16.msra.mxu0 %v4059_v39  ;;  %v4145_v39 = vld [vmem:[#allocation2 + $0x56c] ss:$16 sps:$4 sm:$0xff]  }
 0x2c1   :  { %2296 = vmatpush2.bf16.msra.mxu1 %v4062_v40  ;;  %2256 = vmatprep.subr.bf16.mxu0 %v4067_v41  ;;  %v4148_v40 = vld [vmem:[#allocation2 + $0x76c] ss:$16 sps:$4 sm:$0xff]   ;;  %v4143_v41 = vld [vmem:[#allocation2 + $0x568] ss:$16 sps:$4 sm:$0xff]  }
 0x2c2   :  { %2297 = vmatprep.subr.bf16.mxu1 %v4070_v42  ;;  %v4146_v42 = vld [vmem:[#allocation2 + $0x768] ss:$16 sps:$4 sm:$0xff]  }
 0x2c4   :  { %2257 = vmatpush2.bf16.msra.mxu0 %v4065_v43  ;;  %v4151_v43 = vld [vmem:[#allocation2 + $0x54c] ss:$16 sps:$4 sm:$0xff]  }
 0x2c5   :  { %2298 = vmatpush2.bf16.msra.mxu1 %v4068_v44  ;;  %2308 = vmatprep.subr.bf16.mxu0 %v4073_v45  ;;  %v4154_v44 = vld [vmem:[#allocation2 + $0x74c] ss:$16 sps:$4 sm:$0xff]   ;;  %v4149_v45 = vld [vmem:[#allocation2 + $0x548] ss:$16 sps:$4 sm:$0xff]  }
 0x2c6   :  { %2349 = vmatprep.subr.bf16.mxu1 %v4076_v47  ;;  %v4152_v47 = vld [vmem:[#allocation2 + $0x748] ss:$16 sps:$4 sm:$0xff]  }
 0x2c7   :  { %2259 = vmatmul.mubr.bf16.vlgmr.msra.gmra.mxu0 %v4436_v52  ;;  %v4094_v52 = vld [vmem:[#allocation2 + $0x68c] ss:$16 sps:$4 sm:$0xff]  }
 0x2c8   :  { %2300 = vmatmul.mubr.bf16.vlgmr.msra.gmra.mxu1 %v4441_v0  ;;  %2309 = vmatpush1.bf16.msra.mxu0 %v4071_v48  ;;  %v4092_v0 = vld [vmem:[#allocation2 + $0x688] ss:$16 sps:$4 sm:$0xff]   ;;  %v4157_v48 = vld [vmem:[#allocation2 + $0x52c] ss:$16 sps:$4 sm:$0xff]  }
 0x2c9   :  { %2350 = vmatpush1.bf16.msra.mxu1 %v4074_v49  ;;  %2310 = vmatprep.subr.bf16.mxu0 %v4079_v50  ;;  %v4160_v49 = vld [vmem:[#allocation2 + $0x72c] ss:$16 sps:$4 sm:$0xff]   ;;  %v4155_v50 = vld [vmem:[#allocation2 + $0x528] ss:$16 sps:$4 sm:$0xff]  }
 0x2ca   :  { %2351 = vmatprep.subr.bf16.mxu1 %v4082_v60  ;;  %2340 = vmatprep.mubr.bf16.mxu0 %v4447_v21  ;;  %v4106_v21 = vld [vmem:[#allocation2 + $0x64c] ss:$16 sps:$4 sm:$0xff]   ;;  %v4158_v60 = vld [vmem:[#allocation2 + $0x728] ss:$16 sps:$4 sm:$0xff]  }
 0x2cb   :  { %2381 = vmatprep.mubr.bf16.mxu1 %v4451_v26  ;;  %v4101_v26 = vld [vmem:[#allocation2 + $0x448] ss:$16 sps:$4 sm:$0xff]  }
 0x2cc   :  { %2311 = vmatpush1.bf16.msra.mxu0 %v4077_v7  ;;  %v4163_v7 = vld [vmem:[#allocation2 + $0x50c] ss:$16 sps:$4 sm:$0xff]  }
 0x2cd   :  { %2352 = vmatpush1.bf16.msra.mxu1 %v4080_v51  ;;  %2312 = vmatprep.subr.bf16.mxu0 %v4085_v53  ;;  %v4166_v51 = vld [vmem:[#allocation2 + $0x70c] ss:$16 sps:$4 sm:$0xff]   ;;  %v4161_v53 = vld [vmem:[#allocation2 + $0x508] ss:$16 sps:$4 sm:$0xff]  }
 0x2ce   :  { %2353 = vmatprep.subr.bf16.mxu1 %v4088_v54  ;;  %v4164_v54 = vld [vmem:[#allocation2 + $0x708] ss:$16 sps:$4 sm:$0xff]  }
 0x2d0   :  { %2313 = vmatpush1.bf16.msra.mxu0 %v4083_v55  ;;  %v4167_v55 = vld [vmem:[%s4759_s3 + $0x78] sm:$0xff]  }
 0x2d1   :  { %2354 = vmatpush1.bf16.msra.mxu1 %v4086_v56  ;;  %2314 = vmatprep.subr.bf16.mxu0 %v4091_v57  ;;  %v4168_v56 = vld [vmem:[%s4759_s3 + $0x38] sm:$0xff]   ;;  %v4169_v57 = vld [vmem:[%s4759_s3 + $0x70] sm:$0xff]  }
 0x2d2   :  { %2355 = vmatprep.subr.bf16.mxu1 %v4094_v52 }
 0x2d4   :  { %2315 = vmatpush1.bf16.msra.mxu0 %v4089_v58 }
 0x2d5   :  { %2356 = vmatpush1.bf16.msra.mxu1 %v4092_v0  ;;  %2316 = vmatprep.subr.bf16.mxu0 %v4097_v59  ;;  %v4170_v0 = vld [vmem:[%s4759_s3 + $0x30] sm:$0xff]  }
 0x2d6   :  { %2357 = vmatprep.subr.bf16.mxu1 %v4100_v61 }
 0x2d8   :  { %2317 = vmatpush1.bf16.msra.mxu0 %v4095_v62  ;;  %v4171_v62 = vld [vmem:[%s4759_s3 + $0x68] sm:$0xff]  }
 0x2d9   :  { %2358 = vmatpush1.bf16.msra.mxu1 %v4098_v63  ;;  %2318 = vmatprep.subr.bf16.mxu0 %v4103_v1 }
 0x2da   :  { %2359 = vmatprep.subr.bf16.mxu1 %v4106_v21 }
 0x2dc   :  { %2319 = vmatpush1.bf16.msra.mxu0 %v4101_v26 }
 0x2dd   :  { %2360 = vmatpush1.bf16.msra.mxu1 %v4104_v2  ;;  %2320 = vmatprep.subr.bf16.mxu0 %v4109_v4  ;;  %v4183_v2 = vld [vmem:[%s4759_s3 + $0xf8] sm:$0xff]  }
 0x2de   :  { %2361 = vmatprep.subr.bf16.mxu1 %v4112_v5  ;;  %v4184_v4 = vld [vmem:[%s4759_s3 + $0xb8] sm:$0xff]   ;;  %v4185_v5 = vld [vmem:[%s4759_s3 + $0xf0] sm:$0xff]  }
 0x2e0   :  { %2321 = vmatpush1.bf16.msra.mxu0 %v4107_v6  ;;  %v4174_v6 = vld [vmem:[%s4759_s3 + $0x20] sm:$0xff]  }
 0x2e1   :  { %2362 = vmatpush1.bf16.msra.mxu1 %v4110_v8  ;;  %2322 = vmatprep.subr.bf16.mxu0 %v4115_v9  ;;  %v4186_v8 = vld [vmem:[%s4759_s3 + $0xb0] sm:$0xff]   ;;  %v4175_v9 = vld [vmem:[%s4759_s3 + $0x58] sm:$0xff]  }
 0x2e2   :  { %2363 = vmatprep.subr.bf16.mxu1 %v4118_v10  ;;  %v4187_v10 = vld [vmem:[%s4759_s3 + $0xe8] sm:$0xff]  }
 0x2e4   :  { %2323 = vmatpush1.bf16.msra.mxu0 %v4113_v11  ;;  %v4176_v11 = vld [vmem:[%s4759_s3 + $0x18] sm:$0xff]  }
 0x2e5   :  { %2364 = vmatpush1.bf16.msra.mxu1 %v4116_v12  ;;  %2324 = vmatprep.subr.bf16.mxu0 %v4121_v13  ;;  %v4188_v12 = vld [vmem:[%s4759_s3 + $0xa8] sm:$0xff]   ;;  %v4177_v13 = vld [vmem:[%s4759_s3 + $0x50] sm:$0xff]  }
 0x2e6   :  { %2365 = vmatprep.subr.bf16.mxu1 %v4124_v15  ;;  %v4189_v15 = vld [vmem:[%s4759_s3 + $0xe0] sm:$0xff]  }
 0x2e8   :  { %2325 = vmatpush2.bf16.msra.mxu0 %v4119_v16  ;;  %v4178_v16 = vld [vmem:[%s4759_s3 + $0x10] sm:$0xff]  }
 0x2e9   :  { %2366 = vmatpush2.bf16.msra.mxu1 %v4122_v17  ;;  %2326 = vmatprep.subr.bf16.mxu0 %v4127_v18  ;;  %v4190_v17 = vld [vmem:[%s4759_s3 + $0xa0] sm:$0xff]   ;;  %v4179_v18 = vld [vmem:[%s4759_s3 + $0x48] sm:$0xff]  }
 0x2ea   :  { %2367 = vmatprep.subr.bf16.mxu1 %v4130_v20  ;;  %v4191_v20 = vld [vmem:[%s4759_s3 + $0xd8] sm:$0xff]  }
 0x2ec   :  { %2327 = vmatpush2.bf16.msra.mxu0 %v4125_v22  ;;  %v4180_v22 = vld [vmem:[%s4759_s3 + $0x8] sm:$0xff]  }
 0x2ed   :  { %2368 = vmatpush2.bf16.msra.mxu1 %v4128_v24  ;;  %2328 = vmatprep.subr.bf16.mxu0 %v4133_v25  ;;  %v4192_v24 = vld [vmem:[%s4759_s3 + $0x98] sm:$0xff]   ;;  %v4181_v25 = vld [vmem:[%s4759_s3 + $0x40] sm:$0xff]  }
 0x2ee   :  { %2369 = vmatprep.subr.bf16.mxu1 %v4136_v27  ;;  %v4182_v27 = vld [vmem:[%s4759_s3] sm:$0xff]  }
 0x2f0   :  { %2329 = vmatpush2.bf16.msra.mxu0 %v4131_v28  ;;  %v4563_v28 = vld [vmem:[%s4757_s10 + $0x8] sm:$0xf] }
 0x2f1   :  { %2370 = vmatpush2.bf16.msra.mxu1 %v4134_v29  ;;  %2330 = vmatprep.subr.bf16.mxu0 %v4139_v30  ;;  %v765_v29 = vrot.slane %v4563_v28, %v4417_v32  ;;  %v769_v30 = vrot.slane %v4563_v28, %v4423_v34 }
 0x2f2   :  { %2371 = vmatprep.subr.bf16.mxu1 %v4142_v33 }
 0x2f4   :  { %2331 = vmatpush2.bf16.msra.mxu0 %v4137_v36 }
 0x2f5   :  { %2372 = vmatpush2.bf16.msra.mxu1 %v4140_v38  ;;  %2332 = vmatprep.subr.bf16.mxu0 %v4145_v39  ;;  %v4193_v38 = vld [vmem:[%s4759_s3 + $0xd0] sm:$0xff]  }
 0x2f6   :  { %2373 = vmatprep.subr.bf16.mxu1 %v4148_v40  ;;  %v4194_v40 = vld [vmem:[%s4759_s3 + $0x90] sm:$0xff]  }
 0x2f8   :  { %2333 = vmatpush2.bf16.msra.mxu0 %v4143_v41 }
 0x2f9   :  { %2374 = vmatpush2.bf16.msra.mxu1 %v4146_v42  ;;  %2334 = vmatprep.subr.bf16.mxu0 %v4151_v43 }
 0x2fa   :  { %2375 = vmatprep.subr.bf16.mxu1 %v4154_v44 }
 0x2fc   :  { %2335 = vmatpush2.bf16.msra.mxu0 %v4149_v45 }
 0x2fd   :  { %2376 = vmatpush2.bf16.msra.mxu1 %v4152_v47  ;;  %2336 = vmatprep.subr.bf16.mxu0 %v4157_v48  ;;  %v4195_v48 = vld [vmem:[%s4759_s3 + $0xc8] sm:$0xff]  }
 0x2fe   :  { %2377 = vmatprep.subr.bf16.mxu1 %v4160_v49 }
 0x300   :  { %2337 = vmatpush2.bf16.msra.mxu0 %v4155_v50 }
 0x301   :  { %2378 = vmatpush2.bf16.msra.mxu1 %v4158_v60  ;;  %2338 = vmatprep.subr.bf16.mxu0 %v4163_v7  ;;  %v4196_v60 = vld [vmem:[%s4759_s3 + $0x88] sm:$0xff]  }
 0x302   :  { %2379 = vmatprep.subr.bf16.mxu1 %v4166_v51 }
 0x304   :  { %2339 = vmatpush2.bf16.msra.mxu0 %v4161_v53 }
 0x305   :  { %2380 = vmatpush2.bf16.msra.mxu1 %v4164_v54  ;;  %3648 = vmatprep.subr.bf16.mxu0 %v4167_v55 }
 0x306   :  { %3670 = vmatprep.subr.bf16.mxu1 %v4183_v2  ;;  %v4199_v2 = vld [vmem:[%s4761_s7 + $0x30] ss:$8 sps:$4 sm:$0xff]  }
 0x307   :  { %v2096_v52 = vpop.f32.mrf.mxu0  ;;  %2341 = vmatmul.mubr.bf16.vlgmr.msra.gmra.mxu0 %v4445_v14  ;;  %v4172_v14 = vld [vmem:[%s4759_s3 + $0x28] sm:$0xff]  }
 0x308   :  { %v4487_v58 = vpop.f32.mrf.mxu1  ;;  %2382 = vmatmul.mubr.bf16.vlgmr.msra.gmra.mxu1 %v4449_v23  ;;  %3649 = vmatpush3.bf16.msra.mxu0 %v4168_v56  ;;  %v4173_v23 = vld [vmem:[%s4759_s3 + $0x60] sm:$0xff]   ;;  %v2097_v33 = vadd.f32 %v2096_v52, %v765_v29 }
 0x309   :  { %v2098_v59 = vpop.f32.mrf.mxu0  ;;  %3650 = vmatprep.subr.bf16.mxu0 %v4169_v57  ;;  %3671 = vmatpush3.bf16.msra.mxu1 %v4184_v4  ;;  %v4197_v57 = vld [vmem:[%s4759_s3 + $0xc0] sm:$0xff]   ;;  %v4201_v4 = vld [vmem:[%s4761_s7 + $0x34] ss:$8 sps:$4 sm:$0xff]  }
 0x30a   :  { %v2139_v61 = vpop.f32.mrf.mxu1  ;;  %3672 = vmatprep.subr.bf16.mxu1 %v4185_v5  ;;  %v2099_v36 = vadd.f32 %v2098_v59, %v769_v30  ;;  %v2138_v39 = vadd.f32 %v4487_v58, %v2097_v33  ;;  %v4198_v58 = vld [vmem:[%s4759_s3 + $0x80] sm:$0xff]  }
 0x30b   :  { %v2100_v63 = vpop.f32.mrf.mxu0  ;;  %v4204_v5 = vld [vmem:[%s4761_s7 + $0x24] ss:$8 sps:$4 sm:$0xff]  }
 0x30c   :  { %v2141_v1 = vpop.f32.mrf.mxu1  ;;  %3651 = vmatpush3.bf16.msra.mxu0 %v4170_v0  ;;  %v2140_v43 = vadd.f32 %v2139_v61, %v2099_v36 }
 0x30d   :  { %v2101_v21 = vpop.f32.mrf.mxu0  ;;  %3652 = vmatprep.subr.bf16.mxu0 %v4171_v62  ;;  %3673 = vmatpush3.bf16.msra.mxu1 %v4186_v8  ;;  %v4207_v8 = vld [vmem:[%s4761_s7 + $0x14] ss:$8 sps:$4 sm:$0xff]  }
 0x30e   :  { %v2142_v26 = vpop.f32.mrf.mxu1  ;;  %3674 = vmatprep.subr.bf16.mxu1 %v4187_v10  ;;  %v4210_v10 = vld [vmem:[%s4761_s7 + $0x4] ss:$8 sps:$4 sm:$0xff]  }
 0x310   :  { %3653 = vmatpush3.bf16.msra.mxu0 %v4172_v14 }
 0x311   :  { %3654 = vmatprep.subr.bf16.mxu0 %v4173_v23  ;;  %3675 = vmatpush3.bf16.msra.mxu1 %v4188_v12  ;;  %v4213_v12 = vld [vmem:[%s4760_s6 + $0x34] ss:$8 sps:$4 sm:$0xff]  }
 0x312   :  { %3676 = vmatprep.subr.bf16.mxu1 %v4189_v15  ;;  %v4216_v15 = vld [vmem:[%s4760_s6 + $0x24] ss:$8 sps:$4 sm:$0xff]  }
 0x314   :  { %3655 = vmatpush3.bf16.msra.mxu0 %v4174_v6  ;;  %v4202_v6 = vld [vmem:[%s4761_s7 + $0x20] ss:$8 sps:$4 sm:$0xff]  }
 0x315   :  { %3656 = vmatprep.subr.bf16.mxu0 %v4175_v9  ;;  %3677 = vmatpush3.bf16.msra.mxu1 %v4190_v17  ;;  %v4205_v9 = vld [vmem:[%s4761_s7 + $0x10] ss:$8 sps:$4 sm:$0xff]   ;;  %v773_v17 = vrot.slane %v4563_v28, %v70_v35 }
 0x316   :  { %3678 = vmatprep.subr.bf16.mxu1 %v4191_v20 }
 0x318   :  { %3657 = vmatpush3.bf16.msra.mxu0 %v4176_v11  ;;  %v4208_v11 = vld [vmem:[%s4761_s7] ss:$8 sps:$4 sm:$0xff]  }
 0x319   :  { %3658 = vmatprep.subr.bf16.mxu0 %v4177_v13  ;;  %3679 = vmatpush3.bf16.msra.mxu1 %v4192_v24  ;;  %v4211_v13 = vld [vmem:[%s4760_s6 + $0x30] ss:$8 sps:$4 sm:$0xff]  }
 0x31a   :  { %3680 = vmatprep.subr.bf16.mxu1 %v4193_v38 }
 0x31c   :  { %3659 = vmatpush3.bf16.msra.mxu0 %v4178_v16  ;;  %v4214_v16 = vld [vmem:[%s4760_s6 + $0x20] ss:$8 sps:$4 sm:$0xff]  }
 0x31d   :  { %3660 = vmatprep.subr.bf16.mxu0 %v4179_v18  ;;  %3681 = vmatpush3.bf16.msra.mxu1 %v4194_v40  ;;  %v777_v18 = vrot.slane %v4563_v28, %v74_v37 }
 0x31e   :  { %3682 = vmatprep.subr.bf16.mxu1 %v4195_v48 }
 0x320   :  { %3661 = vmatpush3.bf16.msra.mxu0 %v4180_v22 }
 0x321   :  { %3662 = vmatprep.subr.bf16.mxu0 %v4181_v25  ;;  %3683 = vmatpush3.bf16.msra.mxu1 %v4196_v60 }
 0x322   :  { %3684 = vmatprep.subr.bf16.mxu1 %v4197_v57  ;;  %v4228_v57 = vld [vmem:[%s4762_s8 + $0x28] sm:$0xff]  }
 0x324   :  { %3663 = vmatpush3.bf16.msra.mxu0 %v4182_v27 }
 0x325   :  { %3685 = vmatpush3.bf16.msra.mxu1 %v4198_v58  ;;  %2811 = vmatprep.subr.bf16.mxu0 %v4201_v4  ;;  %v4230_v58 = vld [vmem:[%s4762_s8 + $0x20] sm:$0xff]  }
 0x347   :  { %v2178_v41 = vpop.f32.mrf.mxu0 }
 0x348   :  { %v2219_v42 = vpop.f32.mrf.mxu1  ;;  %v2179_v44 = vadd.f32 %v2178_v41, %v2138_v39 }
 0x349   :  { %v2180_v45 = vpop.f32.mrf.mxu0 }
 0x34a   :  { %v2221_v47 = vpop.f32.mrf.mxu1  ;;  %v2220_v49 = vadd.f32 %v2219_v42, %v2179_v44  ;;  %v2181_v50 = vadd.f32 %v2180_v45, %v2140_v43  ;;  %v4219_v44 = vld [vmem:[%s4760_s6 + $0x14] ss:$8 sps:$4 sm:$0xff]  }
 0x34b   :  { %v2182_v7 = vpop.f32.mrf.mxu0 }
 0x34c   :  { %v2223_v51 = vpop.f32.mrf.mxu1  ;;  %v2222_v53 = vadd.f32 %v2221_v47, %v2181_v50  ;;  %v2390_v54 = vmax.f32 %v2220_v49, 0.0  ;;  %v4217_v47 = vld [vmem:[%s4760_s6 + $0x10] ss:$8 sps:$4 sm:$0xff]   ;;  %v4222_v50 = vld [vmem:[%s4760_s6 + $0x4] ss:$8 sps:$4 sm:$0xff]  }
 0x34d   :  { %v2183_v55 = vpop.f32.mrf.mxu0  ;;  %v4220_v7 = vld [vmem:[%s4760_s6] ss:$8 sps:$4 sm:$0xff]   ;;  %v4223_v51 = vld [vmem:[%s4762_s8 + $0x78] sm:$0xff]  }
 0x34e   :  { %v2224_v56 = vpop.f32.mrf.mxu1  ;;  %v2391_v52 = vmax.f32 %v2222_v53, 0.0  ;;  %v2394_v59 = vpack.c.bf16 %v2390_v54, %v2390_v54  ;;  %v4224_v53 = vld [vmem:[%s4762_s8 + $0x38] sm:$0xff]   ;;  %v4225_v54 = vld [vmem:[%s4762_s8 + $0x70] sm:$0xff]   ;;  %3692 = vmatprep.subr.bf16.mxu1 %v4223_v51 }
 0x34f   :  { %v4226_v55 = vld [vmem:[%s4762_s8 + $0x30] sm:$0xff]   ;;  %v4227_v56 = vld [vmem:[%s4762_s8 + $0x68] sm:$0xff]  }
 0x350   :  { %v2395_v0 = vpack.c.bf16 %v2391_v52, %v2391_v52  ;;  %v4229_v52 = vld [vmem:[%s4762_s8 + $0x60] sm:$0xff]  }
 0x352   :  { %2693 = vmatprep.mubr.bf16.mxu0 %v2395_v0  ;;  %v4231_v0 = vld [vmem:[%s4762_s8 + $0x58] sm:$0xff]  }
 0x353   :  { %2694 = vmatmul.mubr.bf16.vlgmr.msra.gmra.mxu0 %v2394_v59  ;;  %v4232_v59 = vld [vmem:[%s4762_s8 + $0x18] sm:$0xff]  }
 0x354   :  { %2835 = vmatprep.mubr.bf16.mxu0 %v4273_v3  ;;  %2812 = vmatpush1.bf16.msra.mxu0 %v4199_v2 }
 0x355   :  { %2813 = vmatprep.subr.bf16.mxu0 %v4204_v5 }
 0x358   :  { %2814 = vmatpush1.bf16.msra.mxu0 %v4202_v6 }
 0x359   :  { %2815 = vmatprep.subr.bf16.mxu0 %v4207_v8 }
 0x35c   :  { %2816 = vmatpush1.bf16.msra.mxu0 %v4205_v9 }
 0x35d   :  { %2817 = vmatprep.subr.bf16.mxu0 %v4210_v10  ;;  %v4233_v10 = vld [vmem:[%s4762_s8 + $0x50] sm:$0xff]  }
 0x360   :  { %2818 = vmatpush1.bf16.msra.mxu0 %v4208_v11  ;;  %v4234_v11 = vld [vmem:[%s4762_s8 + $0x10] sm:$0xff]  }
 0x361   :  { %2895 = vmatprep.subr.bf16.mxu0 %v4213_v12  ;;  %v4235_v12 = vld [vmem:[%s4762_s8 + $0x48] sm:$0xff]  }
 0x363   :  { %3598 = vmatmul.mubr.msk.bf16.vlgmr.msra.gmra.mxu0 %vm2799_vm2, %v4462_v46 }
 0x364   :  { %2896 = vmatpush1.bf16.msra.mxu0 %v4211_v13  ;;  %2919 = vmatprep.mubr.bf16.mxu0 %v4273_v3  ;;  %v4236_v13 = vld [vmem:[%s4762_s8 + $0x8] sm:$0xff]  }
 0x365   :  { %2897 = vmatprep.subr.bf16.mxu0 %v4216_v15  ;;  %v4237_v15 = vld [vmem:[%s4762_s8 + $0x40] sm:$0xff]  }
 0x368   :  { %2898 = vmatpush1.bf16.msra.mxu0 %v4214_v16  ;;  %v4238_v16 = vld [vmem:[%s4762_s8] sm:$0xff]  }
 0x369   :  { %2899 = vmatprep.subr.bf16.mxu0 %v4219_v44 }
 0x36c   :  { %2900 = vmatpush1.bf16.msra.mxu0 %v4217_v47 }
 0x36d   :  { %2901 = vmatprep.subr.bf16.mxu0 %v4222_v50 }
 0x370   :  { %2902 = vmatpush1.bf16.msra.mxu0 %v4220_v7 }
 0x371   :  { %3749 = vmatprep.subr.bf16.mxu0 %v4275_v19 }
 0x387   :  { %v2260_v61 = vpop.f32.mrf.mxu0 }
 0x388   :  { %v2301_v62 = vpop.f32.mrf.mxu1  ;;  %v2261_v20 = vadd.f32 %v2260_v61, %v773_v17  ;;  %v4239_v17 = vld [vmem:[%s4763_s9 + $0x38] sm:$0xff]  }
 0x389   :  { %v2262_v63 = vpop.f32.mrf.mxu0 }
 0x38a   :  { %v2303_v1 = vpop.f32.mrf.mxu1  ;;  %v2263_v22 = vadd.f32 %v2262_v63, %v777_v18  ;;  %v2302_v46 = vadd.f32 %v2301_v62, %v2261_v20  ;;  %v4240_v18 = vld [vmem:[%s4763_s9 + $0x30] sm:$0xff]   ;;  %v4241_v20 = vld [vmem:[%s4763_s9 + $0x28] sm:$0xff]  }
 0x38b   :  { %v2264_v14 = vpop.f32.mrf.mxu0 }
 0x38c   :  { %v2305_v23 = vpop.f32.mrf.mxu1  ;;  %v2304_v27 = vadd.f32 %v2303_v1, %v2263_v22  ;;  %v3557_v14 = vld [vmem:[%s4757_s10 + $0xc] ss:$0 sm:$0xff]  ;;  %v4242_v22 = vld [vmem:[%s4763_s9 + $0x20] sm:$0xff]  }
 0x38d   :  { %v2265_v21 = vpop.f32.mrf.mxu0 }
 0x38e   :  { %v2306_v26 = vpop.f32.mrf.mxu1 }
 0x3c7   :  { %v2342_v24 = vpop.f32.mrf.mxu0 }
 0x3c8   :  { %v2383_v25 = vpop.f32.mrf.mxu1  ;;  %v2343_v29 = vadd.f32 %v2342_v24, %v2302_v46  ;;  %v4243_v46 = vld [vmem:[%s4763_s9 + $0x18] sm:$0xff]   ;;  %v2928_v24 = vld [vmem:[%s4757_s10 + $0xf] sm:$0x3] }
 0x3c9   :  { %v2344_v30 = vpop.f32.mrf.mxu0 }
 0x3ca   :  { %v2385_v33 = vpop.f32.mrf.mxu1  ;;  %v2384_v3 = vadd.f32 %v2383_v25, %v2343_v29  ;;  %v2345_v36 = vadd.f32 %v2344_v30, %v2304_v27  ;;  %v2933_v25 = vrot.slane %v2928_v24, %v4417_v32  ;;  %v2937_v30 = vrot.slane %v2928_v24, %v4423_v34  ;;  %v4244_v32 = vld [vmem:[%s4763_s9 + $0x10] sm:$0xff]   ;;  %v4245_v34 = vld [vmem:[%s4763_s9 + $0x8] sm:$0xff]  }
 0x3cb   :  { %v2346_v38 = vpop.f32.mrf.mxu0 }
 0x3cc   :  { %v2387_v39 = vpop.f32.mrf.mxu1  ;;  %v2386_v40 = vadd.f32 %v2385_v33, %v2345_v36  ;;  %v2392_v41 = vmax.f32 %v2384_v3, 0.0 }
 0x3cd   :  { %v2347_v35 = vpop.f32.mrf.mxu0 }
 0x3ce   :  { %v2388_v42 = vpop.f32.mrf.mxu1  ;;  %v2393_v31 = vmax.f32 %v2386_v40, 0.0  ;;  %v2396_v37 = vpack.c.bf16 %v2392_v41, %v2392_v41 }
 0x3d0   :  { %v2397_v43 = vpack.c.bf16 %v2393_v31, %v2393_v31 }
 0x3d2   :  { %2733 = vmatprep.mubr.bf16.mxu1 %v2397_v43  ;;  %v4246_v43 = vld [vmem:[%s4763_s9] sm:$0xff]  }
 0x3d3   :  { %2734 = vmatmul.mubr.bf16.vlgmr.msra.gmra.mxu1 %v2396_v37 }
 0x3d4   :  { %3693 = vmatpush3.bf16.msra.mxu1 %v4224_v53 }
 0x3d5   :  { %3694 = vmatprep.subr.bf16.mxu1 %v4225_v54 }
 0x3d8   :  { %3695 = vmatpush3.bf16.msra.mxu1 %v4226_v55 }
 0x3d9   :  { %3696 = vmatprep.subr.bf16.mxu1 %v4227_v56 }
 0x3dc   :  { %3697 = vmatpush3.bf16.msra.mxu1 %v4228_v57 }
 0x3dd   :  { %3698 = vmatprep.subr.bf16.mxu1 %v4229_v52  ;;  %v3634_v52 = vld [vmem:[%s4757_s10 + $0x13] ss:$0 sm:$0xff] }
 0x3e0   :  { %3699 = vmatpush3.bf16.msra.mxu1 %v4230_v58 }
 0x3e1   :  { %3700 = vmatprep.subr.bf16.mxu1 %v4231_v0 }
 0x3e4   :  { %3701 = vmatpush3.bf16.msra.mxu1 %v4232_v59 }
 0x3e5   :  { %3702 = vmatprep.subr.bf16.mxu1 %v4233_v10 }
 0x3e8   :  { %3703 = vmatpush3.bf16.msra.mxu1 %v4234_v11 }
 0x3e9   :  { %3704 = vmatprep.subr.bf16.mxu1 %v4235_v12 }
 0x3ec   :  { %3705 = vmatpush3.bf16.msra.mxu1 %v4236_v13 }
 0x3ed   :  { %3706 = vmatprep.subr.bf16.mxu1 %v4237_v15 }
 0x3f0   :  { %3707 = vmatpush3.bf16.msra.mxu1 %v4238_v16 }
 0x413   :  { %v3664_v28 = vpop.f32.mrf.mxu0 }
 0x415   :  { %v3665_v45 = vpop.f32.mrf.mxu0 }
 0x416   :  { %v3666_v48 = vadd.f32 %v3665_v45, %v3664_v28  ;;  %v3608_v28 = vld [vmem:[%s4757_s10 + $0x11] ss:$0 sm:$0xff] }
 0x417   :  { %v3667_v49 = vpop.f32.mrf.mxu0 }
 0x418   :  { %v2696_v26 = vadd.f32 %v3666_v48, %v3557_v14 }
 0x419   :  { %v3668_v60 = vpop.f32.mrf.mxu0 }
 0x423   :  { %v2837_v61 = vpop.f32.mrf.mxu0 }
 0x425   :  { %v2839_v62 = vpop.f32.mrf.mxu0 }
 0x427   :  { %v2841_v63 = vpop.f32.mrf.mxu0 }
 0x429   :  { %v2842_v1 = vpop.f32.mrf.mxu0 }
 0x493   :  { %v3686_v23 = vpop.f32.mrf.mxu1 }
 0x495   :  { %v3687_v21 = vpop.f32.mrf.mxu1 }
 0x496   :  { %v3688_v2 = vadd.f32 %v3687_v21, %v3686_v23 }
 0x497   :  { %v3689_v4 = vpop.f32.mrf.mxu1 }
 0x498   :  { %v2736_v5 = vadd.f32 %v3688_v2, %v2696_v26 }
 0x499   :  { %v3690_v6 = vpop.f32.mrf.mxu1 }
 0x49a   :  { %v2741_v8 = vmax.f32 %v2736_v5, 0.0 }
 0x49c   :  { %v2742_v9 = vpack.c.bf16 %v2741_v8, %v2741_v8 }
 0x49e   :  { %3607 = vmatmul.mubr.msk.bf16.vlgmr.msra.gmra.mxu0 %vm2799_vm2, %v2742_v9 }
 0x49f   :  { %3765 = vmatprep.mubr.msk.bf16.mxu0 %vm4276_vm1, %v4275_v19  ;;  %3750 = vmatpush3.bf16.msra.mxu0 %v4239_v17 }
 0x4a0   :  { %3751 = vmatprep.subr.bf16.mxu0 %v4275_v19 }
 0x4a3   :  { %3752 = vmatpush3.bf16.msra.mxu0 %v4240_v18 }
 0x4a4   :  { %3753 = vmatprep.subr.bf16.mxu0 %v4275_v19 }
 0x4a7   :  { %3754 = vmatpush3.bf16.msra.mxu0 %v4241_v20 }
 0x4a8   :  { %3755 = vmatprep.subr.bf16.mxu0 %v4275_v19 }
 0x4ab   :  { %3756 = vmatpush3.bf16.msra.mxu0 %v4242_v22 }
 0x4ac   :  { %3757 = vmatprep.subr.bf16.mxu0 %v4275_v19 }
 0x4af   :  { %3758 = vmatpush3.bf16.msra.mxu0 %v4243_v46 }
 0x4b0   :  { %3759 = vmatprep.subr.bf16.mxu0 %v4275_v19 }
 0x4b3   :  { %3760 = vmatpush3.bf16.msra.mxu0 %v4244_v32 }
 0x4b4   :  { %3761 = vmatprep.subr.bf16.mxu0 %v4275_v19 }
 0x4b7   :  { %3762 = vmatpush3.bf16.msra.mxu0 %v4245_v34 }
 0x4b8   :  { %3763 = vmatprep.subr.bf16.mxu0 %v4275_v19  ;;  %v3625_v19 = vld [vmem:[%s4757_s10 + $0x12] ss:$0 sm:$0xff] }
 0x4bb   :  { %3764 = vmatpush3.bf16.msra.mxu0 %v4246_v43 }
 0x55e   :  { %v2921_v27 = vpop.f32.mrf.mxu0 }
 0x55f   :  { %v2922_v29 = vadd.f32 %v2921_v27, %v2837_v61  ;;  %v3635_v61 = vld [vmem:[%s4757_s10 + $0x14] ss:$0 sm:$0xff] }
 0x560   :  { %v2923_v33 = vpop.f32.mrf.mxu0 }
 0x561   :  { %v2940_v3 = vadd.f32 %v2933_v25, %v2922_v29  ;;  %v2924_v36 = vadd.f32 %v2923_v33, %v2839_v62 }
 0x562   :  { %v2925_v38 = vpop.f32.mrf.mxu0 }
 0x563   :  { %v2941_v39 = vadd.f32 %v2937_v30, %v2924_v36  ;;  %v2942_v40 = vmax.f32 %v2940_v3, 0.0 }
 0x564   :  { %v2926_v41 = vpop.f32.mrf.mxu0 }
 0x565   :  { %v2943_v35 = vmax.f32 %v2941_v39, 0.0  ;;  %v2944_v31 = vpack.c.bf16 %v2942_v40, %v2942_v40 }
 0x567   :  { %v2945_v42 = vpack.c.bf16 %v2943_v35, %v2943_v35 }
 0x569   :  { %3113 = vmatprep.mubr.bf16.mxu1 %v2945_v42 }
 0x56a   :  { %3114 = vmatmul.mubr.bf16.vlgmr.msra.gmra.mxu1 %v2944_v31 }
 0x62a   :  { %v3708_v37 = vpop.f32.mrf.mxu1 }
 0x62c   :  { %v3709_v44 = vpop.f32.mrf.mxu1 }
 0x62d   :  { %v3710_v45 = vadd.f32 %v3709_v44, %v3708_v37 }
 0x62e   :  { %v3711_v47 = vpop.f32.mrf.mxu1 }
 0x62f   :  { %v3116_v48 = vadd.f32 %v3710_v45, %v3608_v28 }
 0x630   :  { %v3712_v49 = vpop.f32.mrf.mxu1 }
 0x631   :  { %v3121_v50 = vmax.f32 %v3116_v48, 0.0 }
 0x633   :  { %v3122_v60 = vpack.c.bf16 %v3121_v50, %v3121_v50 }
 0x635   :  { %3766 = vmatmul.mubr.bf16.vlgmr.msra.gmra.mxu0 %v3122_v60 }
 0x6f5   :  { %v3228_v7 = vpop.f32.mrf.mxu0 }
 0x6f6   :  { %v3229_v51 = vadd.f32 %v3625_v19, %v3228_v7 }
 0x6f7   :  { %v3767_v53 = vpop.f32.mrf.mxu0 }
 0x6f8   :  { %v3234_v54 = vmax.f32 %v3229_v51, 0.0 }
 0x6f9   :  { %v3231_v55 = vpop.f32.mrf.mxu0 }
 0x6fa   :  { %v3235_v56 = vpack.c.bf16 %v3234_v54, %v3234_v54 }
 0x6fb   :  { %v3768_v57 = vpop.f32.mrf.mxu0 }
 0x6fc   :  { %v3238_v58 = vunpack.c.l.bf16 %v3235_v56 }
 0x6fe   :  { %v3245_v0 = vmul.f32 %v3634_v52, %v3238_v58 }
 0x700   :  { %v3246_v59 = vsel %vm2799_vm2, %v3245_v0, 0.0 }
 0x701   :  { %3247 = vadd.xlane.f32.xlu0 %v3246_v59 }
 0x78a   :  { %v3248_v62 = vpop.xlane.xlu0 %3247 }
 0x78b   :  { %v3255_v63 = vadd.f32 %v3635_v61, %v3248_v62 }
 0x78d   :  { %v3256_v1 = vand.u32 2147483647, %v3255_v63  ;;  %vm3262_vm4 = vcmp.ge.f32.partialorder %v3255_v63, 0.0 }
 0x78f   :  { %v3257_v14 = vsub.f32 0.0, %v3256_v1 }
 0x791   :  { %v3258_v23 = vmul.f32 1.442695, %v3257_v14 }
 0x793   :  { %4247 = vpow2.f32 %v3258_v23 }
 0x7a0   :  { %v4248_v21 = vpop.eup %4247 }
 0x7a1   :  { %v3260_v26 = vadd.f32 1.0, %v4248_v21 }
 0x7a3   :  { %4249 = vrcp.f32 %v3260_v26 }
 0x7b0   :  { %v4250_v2 = vpop.eup %4249 }
 0x7b1   :  { %v3263_v4 = vmul.f32 %v4250_v2, %v4248_v21 }
 0x7b3   :  { %v3264_v5 = vsel %vm3262_vm4, %v4250_v2, %v3263_v4 }
 0x7b4   :  { %3266 = vst.msk [vmem:[%s4764_s11] sm:$0xff] %vm3265_vm3, %v3264_v5 }
 0x7b5   :  { %3271 = vsyncmov [#allocation3] }
 0x7b8   :  { %s3272_s10 = vpop.sfrf %3271 }
 0x7b9   :  { %p3636_p5 = scmp.ne.s32.totalorder %s3272_s10, 0 }
 0x7bb   :  { %3276 = shalt.err (%p3636_p5)  }

</bundles_post_ra>
